<compile_context>
chip_gen: v7x
topology: tpu7x:2x2x1
jax: 0.10.0
libtpu: 0.0.40
codegen_flags: <defaults>
</compile_context>

<pallas_src>
import functools

import jax
import jax.numpy as jnp
from jax import lax
from jax.experimental import pallas as pl
from jax.experimental.pallas import tpu as pltpu


# ------------------------------ small helpers -------------------------------

def _device_kind():
    try:
        return jax.devices()[0].device_kind.lower()
    except Exception:
        return ""


def _is_v5():
    return "v5" in _device_kind()


def _kernel_vmem_limit():
    kind = _device_kind()
    if "v2" in kind or "v3" in kind:
        return None                      # tiny-VMEM generations: keep compiler default
    if "v7" in kind or "7x" in kind:
        return 48 * 1024 * 1024          # v7x: 64 MiB physical per TC, leave headroom
    return 100 * 1024 * 1024             # v5e/v5p/v6e: 128 MiB physical


def _pick_row_tile(h, target=32):
    """Largest divisor of h that is <= target (falls back to h)."""
    if h <= target:
        return h
    for t in range(target, 0, -1):
        if h % t == 0:
            return t if t >= 8 else h
    return h


# ----------------------------- Pallas kernels ------------------------------

def _pw_bn_relu_kernel(x_ref, w_ref, s_ref, b_ref, o_ref):
    # x:(TM,Cin) f32 -> bf16 (in-kernel cast, VPU, free under the mem-bound regime)
    # @ w:(Cin,Cout) bf16 -> f32 acc -> folded-BN affine -> relu -> bf16 store
    x = x_ref[...].astype(w_ref.dtype)
    y = jnp.dot(x, w_ref[...], preferred_element_type=jnp.float32)
    y = y * s_ref[...] + b_ref[...]
    o_ref[...] = jnp.maximum(y, 0.0).astype(o_ref.dtype)


def _fused_conv2_conv3_kernel(pm_ref, pc_ref, pp_ref, res_ref,
                              w2_ref, s2_ref, b2_ref, w3_ref, s3_ref, b3_ref,
                              o_ref, slab, *,
                              dilation, D, H, W, row_tile, fold_kw):
    # pm/pc/pp: (1,1,H,W,Cm) bf16 h1 depth planes at d-dil, d, d+dil (index clamped into range;
    #           out-of-range planes are masked out of the accumulation below).
    # res_ref : (1,1,TH,W,C4) f32 residual row block of the original input.
    # w2_ref  : (3,3,3*Cm,Cm) bf16 if fold_kw else (3,3,3,Cm,Cm) bf16.
    # w3_ref  : (Cm,C4) bf16 ; s*/b*: (1,C) f32 folded-BN scale/bias.
    # o_ref   : (1,1,TH,W,C4) f32 output row block.
    # slab    : VMEM (3, H+2*dil, W+2*dil, Cm) bf16 zero-padded depth-tap slab (built at h==0).
    d = pl.program_id(1)
    hblk = pl.program_id(2)
    pad = dilation
    Cm = w3_ref.shape[0]
    C4 = w3_ref.shape[1]
    Hp = H + 2 * pad
    Wp = W + 2 * pad
    Wo = W
    TH = row_tile

    # ---- zero the H/W halo strips once per (n) sweep; DMAs/copies never touch them ----
    @pl.when(jnp.logical_and(d == 0, hblk == 0))
    def _zero_halo():
        z_h = jnp.zeros((3, pad, Wp, Cm), slab.dtype)
        slab[:, 0:pad, :, :] = z_h
        slab[:, H + pad:Hp, :, :] = z_h
        z_w = jnp.zeros((3, Hp, pad, Cm), slab.dtype)
        slab[:, :, 0:pad, :] = z_w
        slab[:, :, W + pad:Wp, :] = z_w

    # ---- stage the three depth-tap planes into the slab interior once per (n, d) ----
    @pl.when(hblk == 0)
    def _stage_planes():
        slab[0, pad:pad + H, pad:pad + W, :] = pm_ref[0, 0]
        slab[1, pad:pad + H, pad:pad + W, :] = pc_ref[0, 0]
        slab[2, pad:pad + H, pad:pad + W, :] = pp_ref[0, 0]

    # ---- conv2 (3x3x3, dilated) for this output row block ----
    r0 = hblk * TH                                   # first output row of this block
    acc = jnp.zeros((TH * Wo, Cm), jnp.float32)
    for kd in range(3):
        dd = d + (kd - 1) * dilation
        valid = jnp.logical_and(dd >= 0, dd < D)     # zero-pad contribution along D
        contrib = jnp.zeros((TH * Wo, Cm), jnp.float32)
        for kh in range(3):
            rows = slab[kd, pl.ds(r0 + kh * dilation, TH), :, :]   # (TH, Wp, Cm)
            if fold_kw:
                # fold kw taps into one K = 3*Cm contraction (good MXU fill for Cm <= 128)
                patch = jnp.concatenate(
                    [rows[:, kw * dilation: kw * dilation + Wo, :] for kw in range(3)],
                    axis=-1).reshape(TH * Wo, 3 * Cm)
                contrib = contrib + jnp.dot(patch, w2_ref[kd, kh],
                                            preferred_element_type=jnp.float32)
            else:
                # per-kw accumulation: no concat copies (v5e / large Cm)
                for kw in range(3):
                    win = rows[:, kw * dilation: kw * dilation + Wo, :]
                    contrib = contrib + jnp.dot(win.reshape(TH * Wo, Cm),
                                                w2_ref[kd, kh, kw],
                                                preferred_element_type=jnp.float32)
        acc = acc + jnp.where(valid, contrib, 0.0)

    # ---- bn2 + relu (f32 epilogue) ----
    h2 = jnp.maximum(acc * s2_ref[...] + b2_ref[...], 0.0)
    # ---- conv3 (1x1x1) + bn3 + residual + relu, fused epilogue ----
    y = jnp.dot(h2.astype(w3_ref.dtype), w3_ref[...],
                preferred_element_type=jnp.float32)
    y = y * s3_ref[...] + b3_ref[...]
    y = y + res_ref[0, 0].reshape(TH * Wo, C4)
    o_ref[0, 0] = jnp.maximum(y, 0.0).reshape(TH, Wo, C4).astype(o_ref.dtype)


# ------------------------------ Pallas wrappers -----------------------------

def pointwise_bn_relu(x2d, w, scale, bias, out_dtype, tm=1024, vmem_limit_bytes=None):
    M, Cin = x2d.shape
    Cout = w.shape[1]
    tm = min(tm, M)
    grid = (pl.cdiv(M, tm),)
    flops = 2 * M * Cin * Cout
    bytes_accessed = (M * Cin * x2d.dtype.itemsize + Cin * Cout * w.dtype.itemsize
                      + 2 * Cout * 4 + M * Cout * jnp.dtype(out_dtype).itemsize)
    return pl.pallas_call(
        _pw_bn_relu_kernel,
        out_shape=jax.ShapeDtypeStruct((M, Cout), out_dtype),
        grid=grid,
        in_specs=[pl.BlockSpec((tm, Cin), lambda i: (i, 0)),
                  pl.BlockSpec((Cin, Cout), lambda i: (0, 0)),
                  pl.BlockSpec((1, Cout), lambda i: (0, 0)),
                  pl.BlockSpec((1, Cout), lambda i: (0, 0))],
        out_specs=pl.BlockSpec((tm, Cout), lambda i: (i, 0)),
        compiler_params=pltpu.CompilerParams(
            dimension_semantics=("parallel",),
            vmem_limit_bytes=vmem_limit_bytes),
        cost_estimate=pl.CostEstimate(flops=flops, transcendentals=0,
                                      bytes_accessed=bytes_accessed),
    )(x2d, w, scale, bias)


def fused_conv2_conv3(h1, x_res, w2, s2, b2, w3, s3, b3, *, dilation, fold_kw,
                      row_tile_target=32, vmem_limit_bytes=None):
    # h1   : (N, D, H, W, Cm) bf16, UNPADDED conv1 output
    # x_res: (N, D, H, W, C4) f32 residual (original input, NDHWC)
    # w2   : (3, 3, 3, Cm, Cm) bf16 ; w3: (Cm, C4) bf16 ; s*/b*: (1, C) f32
    N, D, H, W, Cm = h1.shape
    C4 = w3.shape[1]
    assert x_res.shape == (N, D, H, W, C4)
    pad = dilation
    Hp, Wp = H + 2 * pad, W + 2 * pad
    TH = _pick_row_tile(H, row_tile_target)
    HB = H // TH

    w2k = w2.reshape(3, 3, 3 * Cm, Cm) if fold_kw else w2   # kw folded into K when beneficial

    def plane_spec(delta):
        # one depth plane per (n, d) step; index clamped into range (OOB planes are masked
        # out in the kernel, which is equivalent to the conv's zero padding along D).
        return pl.BlockSpec(
            (1, 1, H, W, Cm),
            lambda n, d, h, delta=delta: (n, jnp.clip(d + delta, 0, D - 1), 0, 0, 0))

    kern = functools.partial(_fused_conv2_conv3_kernel,
                             dilation=dilation, D=D, H=H, W=W,
                             row_tile=TH, fold_kw=fold_kw)

    flops = 2 * N * D * H * W * (27 * Cm * Cm + Cm * C4)
    bytes_accessed = (3 * h1.size * h1.dtype.itemsize + x_res.size * 4
                      + w2k.size * w2k.dtype.itemsize + w3.size * w3.dtype.itemsize
                      + (2 * Cm + 2 * C4) * 4 + N * D * H * W * C4 * 4)

    def build_and_call(single_buffer_const):
        def const_spec(arr):
            nd = arr.ndim
            if single_buffer_const:
                # grid-invariant inputs: a second pipeline buffer is pure VMEM waste
                return pl.BlockSpec(arr.shape,
                                    lambda n, d, h, _nd=nd: (0,) * _nd,
                                    pipeline_mode=pl.Buffered(1))
            return pl.BlockSpec(arr.shape, lambda n, d, h, _nd=nd: (0,) * _nd)

        return pl.pallas_call(
            kern,
            out_shape=jax.ShapeDtypeStruct((N, D, H, W, C4), jnp.float32),
            grid=(N, D, HB),
            in_specs=[
                plane_spec(-dilation), plane_spec(0), plane_spec(dilation),
                pl.BlockSpec((1, 1, TH, W, C4), lambda n, d, h: (n, d, h, 0, 0)),
                const_spec(w2k), const_spec(s2), const_spec(b2),
                const_spec(w3), const_spec(s3), const_spec(b3),
            ],
            out_specs=pl.BlockSpec((1, 1, TH, W, C4), lambda n, d, h: (n, d, h, 0, 0)),
            scratch_shapes=[pltpu.VMEM((3, Hp, Wp, Cm), h1.dtype)],
            compiler_params=pltpu.CompilerParams(
                # N parallel (megacore shards whole batch elements), D/H-block sequential so
                # the slab scratch built at (d==0 / h==0) is valid per core.
                dimension_semantics=("parallel", "arbitrary", "arbitrary"),
                vmem_limit_bytes=vmem_limit_bytes),
            cost_estimate=pl.CostEstimate(flops=flops, transcendentals=0,
                                          bytes_accessed=bytes_accessed),
        )(h1, h1, h1, x_res, w2k, s2, b2, w3, s3, b3)

    try:
        return build_and_call(True)
    except Exception:
        # pipeline_mode=pl.Buffered(1) unsupported on this jax version -> default buffering
        return build_and_call(False)


# ------------------------------ Module wrapper -------------------------------

def init_params(key, inplanes, planes, eps=1e-5):
    ks = jax.random.split(key, 15)
    p = {}
    p["w1"] = jax.random.normal(ks[0], (inplanes, planes), jnp.float32) * 0.1
    p["w2"] = jax.random.normal(ks[1], (3, 3, 3, planes, planes), jnp.float32) * 0.1
    p["w3"] = jax.random.normal(ks[2], (planes, 4 * planes), jnp.float32) * 0.1

    def bn(kg, kb, km, kv, c):
        gamma = 1.0 + 0.1 * jax.random.normal(kg, (c,), jnp.float32)
        beta = 0.1 * jax.random.normal(kb, (c,), jnp.float32)
        mean = 0.1 * jax.random.normal(km, (c,), jnp.float32)
        var = 1.0 + 0.1 * jax.random.uniform(kv, (c,), jnp.float32)
        scale = gamma * lax.rsqrt(var + eps)
        bias = beta - mean * scale
        return scale, bias

    p["s1"], p["b1"] = bn(ks[3], ks[4], ks[5], ks[6], planes)
    p["s2"], p["b2"] = bn(ks[7], ks[8], ks[9], ks[10], planes)
    p["s3"], p["b3"] = bn(ks[11], ks[12], ks[13], ks[14], 4 * planes)
    return p


def bottleneck_forward(x_ncdhw, p, *, stride=1, dilation=1):
    if stride != 1:
        # TODO(synk): stride>1 requires the (unimplemented) downsample residual path.
        raise NotImplementedError("stride>1 / downsample not implemented")

    x = jnp.transpose(x_ncdhw, (0, 2, 3, 4, 1)).astype(jnp.float32)  # NDHWC, f32 residual path
    N, D, H, W, Cin = x.shape
    planes = p["w1"].shape[1]
    assert Cin == 4 * planes, "identity residual requires inplanes == planes * 4"

    vmem_limit = _kernel_vmem_limit()

    # conv1 (1x1x1) + bn1 + relu — streaming pointwise matmul (f32 in, bf16 cast in-kernel)
    h1 = pointwise_bn_relu(x.reshape(N * D * H * W, Cin),
                           p["w1"].astype(jnp.bfloat16),
                           p["s1"].reshape(1, -1), p["b1"].reshape(1, -1),
                           out_dtype=jnp.bfloat16, tm=1024,
                           vmem_limit_bytes=vmem_limit)
    h1 = h1.reshape(N, D, H, W, planes)

    # kw fold fills the 256-deep MXU (v6e/v7x) only while K=3*Cm stays <= ~384;
    # on v5e (128-deep MXU) the fold only adds concat copies.
    fold_kw = (planes <= 128) and not _is_v5()

    # conv2 + bn2 + relu + conv3 + bn3 + residual + relu (single fused Pallas call,
    # D-halo streamed, halo zero-padding built in VMEM — no wrapper jnp.pad round trip)
    out = fused_conv2_conv3(h1, x, p["w2"].astype(jnp.bfloat16),
                            p["s2"].reshape(1, -1), p["b2"].reshape(1, -1),
                            p["w3"].astype(jnp.bfloat16),
                            p["s3"].reshape(1, -1), p["b3"].reshape(1, -1),
                            dilation=dilation, fold_kw=fold_kw,
                            vmem_limit_bytes=vmem_limit)
    return jnp.transpose(out, (0, 4, 1, 2, 3))  # back to NCDHW


def reference_forward(x_ncdhw, p, *, stride=1, dilation=1):
    # Matches the kernel's dtype pipeline: bf16 matmul inputs, f32 accumulation/epilogues.
    x = jnp.transpose(x_ncdhw, (0, 2, 3, 4, 1)).astype(jnp.float32)
    xb = x.astype(jnp.bfloat16)
    h = jnp.einsum("ndhwc,co->ndhwo", xb, p["w1"].astype(jnp.bfloat16),
                   preferred_element_type=jnp.float32)
    h = jnp.maximum(h * p["s1"] + p["b1"], 0.0)
    h = lax.conv_general_dilated(h.astype(jnp.bfloat16), p["w2"].astype(jnp.bfloat16),
                                 window_strides=(stride,) * 3,
                                 padding=[(dilation, dilation)] * 3,
                                 rhs_dilation=(dilation,) * 3,
                                 dimension_numbers=("NDHWC", "DHWIO", "NDHWC"),
                                 preferred_element_type=jnp.float32)
    h = jnp.maximum(h * p["s2"] + p["b2"], 0.0)
    h = jnp.einsum("ndhwc,co->ndhwo", h.astype(jnp.bfloat16),
                   p["w3"].astype(jnp.bfloat16),
                   preferred_element_type=jnp.float32)
    h = jnp.maximum(h * p["s3"] + p["b3"] + x, 0.0)
    return jnp.transpose(h, (0, 4, 1, 2, 3))


if __name__ == "__main__":
    # NOTE: toy channel counts (planes=4) under-fill the 128-lane axis; production configs
    # should use planes >= 64 for realistic MXU/lane utilization.
    inplanes, planes = 16, 4          # inplanes == planes * expansion so downsample=None is valid
    N, D, H, W = 2, 8, 8, 8

    key = jax.random.PRNGKey(0)
    kx, kp = jax.random.split(key)
    x = jax.random.normal(kx, (N, inplanes, D, H, W), jnp.float32)   # NCDHW, like PyTorch
    params = init_params(kp, inplanes, planes)

    ok = True
    for dil in (1, 2):
        out = bottleneck_forward(x, params, stride=1, dilation=dil)
        out = jax.block_until_ready(out)
        ref = reference_forward(x, params, stride=1, dilation=dil)
        assert out.shape == (N, 4 * planes, D, H, W)
        err = float(jnp.max(jnp.abs(out - ref)))
        if err > 1e-2:                # bf16 matmul inputs -> allow bf16-level rounding differences
            ok = False
            raise AssertionError(f"dilation={dil}: mismatch vs reference, max abs err {err}")
    if ok:
        print("KERNEL_OK")
</pallas_src>

<mosaic_0001>
module attributes {stable_mosaic.version = 11 : i64} {
  func.func @_pw_bn_relu_kernel(%arg0: i32, %arg1: memref<1024x16xf32, #tpu.memory_space<vmem>>, %arg2: memref<16x4xbf16, #tpu.memory_space<vmem>>, %arg3: memref<1x4xf32, #tpu.memory_space<vmem>>, %arg4: memref<1x4xf32, #tpu.memory_space<vmem>>, %arg5: memref<1024x4xbf16, #tpu.memory_space<vmem>>) attributes {dimension_semantics = [#tpu.dimension_semantics<parallel>], iteration_bounds = array<i64: 1>, scalar_prefetch = 0 : i64, scratch_operands = 0 : i64, tpu.core_type = #tpu.core_type<tc>, window_params = [{transform_indices = @transform_0, window_bounds = array<i64: 1024, 16>}, {pipeline_mode = #tpu.pipeline_mode<synchronous>, transform_indices = @transform_1, window_bounds = array<i64: 16, 4>}, {pipeline_mode = #tpu.pipeline_mode<synchronous>, transform_indices = @transform_2, window_bounds = array<i64: 1, 4>}, {pipeline_mode = #tpu.pipeline_mode<synchronous>, transform_indices = @transform_3, window_bounds = array<i64: 1, 4>}, {transform_indices = @transform_4, window_bounds = array<i64: 1024, 4>}]} {
    %c0 = arith.constant 0 : index
    %c0_0 = arith.constant 0 : index
    %0 = vector.load %arg1[%c0, %c0_0] : memref<1024x16xf32, #tpu.memory_space<vmem>>, vector<1024x16xf32>
    %1 = arith.truncf %0 : vector<1024x16xf32> to vector<1024x16xbf16>
    %c0_1 = arith.constant 0 : index
    %c0_2 = arith.constant 0 : index
    %2 = vector.load %arg2[%c0_1, %c0_2] : memref<16x4xbf16, #tpu.memory_space<vmem>>, vector<16x4xbf16>
    %cst = arith.constant dense<0.000000e+00> : vector<1024x4xf32>
    %3 = tpu.matmul %1, %2, %cst {dimension_numbers = #tpu.dot_dimension_numbers<[1], [0], [0], [1], [0, 0, 1, 1], [], []>} : vector<1024x16xbf16>, vector<16x4xbf16>, vector<1024x4xf32> -> vector<1024x4xf32>
    %c0_3 = arith.constant 0 : index
    %c0_4 = arith.constant 0 : index
    %4 = vector.load %arg3[%c0_3, %c0_4] : memref<1x4xf32, #tpu.memory_space<vmem>>, vector<1x4xf32>
    %5 = vector.broadcast %4 : vector<1x4xf32> to vector<1024x4xf32>
    %6 = arith.mulf %3, %5 : vector<1024x4xf32>
    %c0_5 = arith.constant 0 : index
    %c0_6 = arith.constant 0 : index
    %7 = vector.load %arg4[%c0_5, %c0_6] : memref<1x4xf32, #tpu.memory_space<vmem>>, vector<1x4xf32>
    %8 = vector.broadcast %7 : vector<1x4xf32> to vector<1024x4xf32>
    %9 = arith.addf %6, %8 : vector<1024x4xf32>
    %cst_7 = arith.constant 0.000000e+00 : f32
    %10 = vector.broadcast %cst_7 : f32 to vector<1024x4xf32>
    %11 = arith.maximumf %9, %10 : vector<1024x4xf32>
    %12 = arith.truncf %11 : vector<1024x4xf32> to vector<1024x4xbf16>
    %c0_8 = arith.constant 0 : index
    %c0_9 = arith.constant 0 : index
    %13 = vector.load %arg5[%c0_8, %c0_9] : memref<1024x4xbf16, #tpu.memory_space<vmem>>, vector<1024x4xbf16>
    tpu.vector_store %arg5[%c0_8, %c0_9], %12 {strides = array<i32>} : memref<1024x4xbf16, #tpu.memory_space<vmem>>, vector<1024x4xbf16>,
    return
  }
  func.func @transform_0(%arg0: i32) -> (i32, i32) {
    %c0_i32 = arith.constant 0 : i32
    %c0_i32_0 = arith.constant 0 : i32
    return %arg0, %c0_i32 : i32, i32
  }
  func.func @transform_1(%arg0: i32) -> (i32, i32) {
    %c0_i32 = arith.constant 0 : i32
    %c0_i32_0 = arith.constant 0 : i32
    %c0_i32_1 = arith.constant 0 : i32
    return %c0_i32, %c0_i32_0 : i32, i32
  }
  func.func @transform_2(%arg0: i32) -> (i32, i32) {
    %c0_i32 = arith.constant 0 : i32
    %c0_i32_0 = arith.constant 0 : i32
    %c0_i32_1 = arith.constant 0 : i32
    return %c0_i32, %c0_i32_0 : i32, i32
  }
  func.func @transform_3(%arg0: i32) -> (i32, i32) {
    %c0_i32 = arith.constant 0 : i32
    %c0_i32_0 = arith.constant 0 : i32
    %c0_i32_1 = arith.constant 0 : i32
    return %c0_i32, %c0_i32_0 : i32, i32
  }
  func.func @transform_4(%arg0: i32) -> (i32, i32) {
    %c0_i32 = arith.constant 0 : i32
    %c0_i32_0 = arith.constant 0 : i32
    return %arg0, %c0_i32 : i32, i32
  }
}

</mosaic_0001>

<bundles_post_ra>
// kernel: tpu_custom_call.1
= control target key start
LH: loop header
LB: loop body
LE: loop exit
PB: predicated region body
PF: predicated region fallthrough
CT: control target
= control target key end

     0   :  { %9 = vsyncpa [#allocation3], 0  ;;  %s3272_s0 = inlined_call_operand.hbm [shape: f32[1024,16], index: 0, kind: input, shape index: {}]   ;;  %s3273_s1 = inlined_call_operand.hbm [shape: bf16[16,4], index: 1, kind: input, shape index: {}]   ;;  %s3274_s2 = inlined_call_operand.hbm [shape: f32[1,4], index: 2, kind: input, shape index: {}]   ;;  %s3275_s3 = inlined_call_operand.hbm [shape: f32[1,4], index: 3, kind: input, shape index: {}]   ;;  %s3276_s4 = inlined_call_operand.hbm [shape: bf16[1024,4], index: 4, kind: output, shape index: {}]  }
   0x1   :  { %10 = vsyncpa [#allocation6], 0 }
   0x2   :  { %11 = vsyncpa [#allocation9], 0 }
   0x3   :  { %12 = vsyncpa [#allocation4], 0  ;;  %s2716_s15 = smov [#allocation5]   ;;  %s2598_s19 = scalar_lea.hbm %s3273_s1, 128 }
   0x4   :  { %s30_s16 = sshll.u32 %s2716_s15, 4  ;;  %p2599_p0 = scmp.ne.s32.totalorder %s3273_s1, %s2598_s19  ;;  %s31_s16 = int_to_ptr.vmem [resolvable:$true] %s30_s16 }
   0x5   :  { %p2602_p1 = scmp.lt.u32.totalorder %s2598_s19, %s3273_s1 }
   0x7   :  { %p2604_p2 = pnand %p2602_p1, %p2599_p0 }
   0x9   :  { %2607 = shalt.err (!%p2604_p2)
}
   0xa   :  { %s2608_s24 = scalar_lea.vmem %s31_s16, 128  ;;  %p2613_p4 = scmp.lt.s32.totalorder %s31_s16, %s31_s16 }
   0xb   :  { %p2609_p3 = scmp.ne.s32.totalorder %s31_s16, %s2608_s24  ;;  %p2614_p5 = scmp.lt.s32.totalorder %s2608_s24, %s2608_s24 }
   0xd   :  { %p2615_p6 = por %p2614_p5, %p2613_p4 }
   0xf   :  { %p2616_p7 = pnand %p2615_p6, %p2609_p3 }
  0x11   :  { %2619 = shalt.err (!%p2616_p7)
}
  0x12   :  { %s2717_s25 = smov 64   ;;  %s2718_s26 = smov 4  }
  0x13   :  { %36 = dma.hbm_to_vmem [thread:$0]  %s3273_s1, 128, %s31_s16, [#allocation6], %s2717_s25, %s2717_s25, %s2718_s26  }
  0x14   :  { %s2719_s29 = smov [#allocation2]   ;;  %s2620_s7 = scalar_lea.hbm %s3272_s0, 16384 }
  0x15   :  { %s18_s30 = sshll.u32 %s2719_s29, 4  ;;  %p2621_p8 = scmp.ne.s32.totalorder %s3272_s0, %s2620_s7  ;;  %s19_s30 = int_to_ptr.vmem [resolvable:$true] %s18_s30 }
  0x16   :  { %p2624_p9 = scmp.lt.u32.totalorder %s2620_s7, %s3272_s0 }
  0x18   :  { %p2626_p10 = pnand %p2624_p9, %p2621_p8 }
  0x1a   :  { %2629 = shalt.err (!%p2626_p10)
}
  0x1b   :  { %s2630_s12 = scalar_lea.vmem %s19_s30, 16384  ;;  %p2635_p12 = scmp.lt.s32.totalorder %s19_s30, %s19_s30 }
  0x1c   :  { %p2631_p11 = scmp.ne.s32.totalorder %s19_s30, %s2630_s12  ;;  %p2636_p13 = scmp.lt.s32.totalorder %s2630_s12, %s2630_s12 }
  0x1e   :  { %p2637_p0 = por %p2636_p13, %p2635_p12 }
  0x20   :  { %p2638_p1 = pnand %p2637_p0, %p2631_p11 }
  0x22   :  { %2641 = shalt.err (!%p2638_p1)
}
  0x23   :  { %s2720_s1 = smov 128   ;;  %s2721_s13 = smov 8  }
  0x24   :  { %24 = dma.hbm_to_vmem [thread:$0]  %s3272_s0, 16384, %s19_s30, [#allocation3], %s2720_s1, %s2720_s1, %s2721_s13  }
  0x25   :  { %s2722_s16 = smov [#allocation7]   ;;  %s2723_s18 = smov [#allocation8]  }
  0x26   :  { %s43_s17 = sshll.u32 %s2722_s16, 4  ;;  %s53_s19 = sshll.u32 %s2723_s18, 4  ;;  %s44_s17 = int_to_ptr.vmem [resolvable:$true] %s43_s17  ;;  %s54_s19 = int_to_ptr.vmem [resolvable:$true] %s53_s19 }
  0x27   :  { %s2642_s22 = scalar_lea.hbm %s3274_s2, 16 }
  0x28   :  { %p2643_p2 = scmp.ne.s32.totalorder %s3274_s2, %s2642_s22  ;;  %p2646_p3 = scmp.lt.u32.totalorder %s2642_s22, %s3274_s2 }
  0x2a   :  { %p2648_p4 = pnand %p2646_p3, %p2643_p2 }
  0x2c   :  { %2651 = shalt.err (!%p2648_p4)
}
  0x2d   :  { %s2652_s0 = scalar_lea.vmem %s44_s17, 16  ;;  %s2656_s29 = scalar_lea.vmem %s44_s17, 32 }
  0x2e   :  { %p2653_p5 = scmp.ne.s32.totalorder %s44_s17, %s2652_s0  ;;  %p2657_p6 = scmp.lt.s32.totalorder %s44_s17, %s44_s17 }
  0x2f   :  { %p2658_p7 = scmp.lt.s32.totalorder %s2656_s29, %s2652_s0 }
  0x31   :  { %p2659_p8 = por %p2658_p7, %p2657_p6 }
  0x33   :  { %p2660_p9 = pnand %p2659_p8, %p2653_p5 }
  0x35   :  { %2663 = shalt.err (!%p2660_p9)
}
  0x36   :  { %46 = dma.hbm_to_vmem [thread:$0]  %s3274_s2, 16, %s44_s17, [#allocation6]  }
  0x37   :  { %s2664_s8 = scalar_lea.hbm %s3275_s3, 16 }
  0x38   :  { %p2665_p10 = scmp.ne.s32.totalorder %s3275_s3, %s2664_s8  ;;  %p2668_p11 = scmp.lt.u32.totalorder %s2664_s8, %s3275_s3 }
  0x3a   :  { %p2670_p12 = pnand %p2668_p11, %p2665_p10 }
  0x3c   :  { %2673 = shalt.err (!%p2670_p12)
}
  0x3d   :  { %s2674_s1 = scalar_lea.vmem %s54_s19, 16  ;;  %s2678_s13 = scalar_lea.vmem %s54_s19, 32 }
  0x3e   :  { %p2675_p13 = scmp.ne.s32.totalorder %s54_s19, %s2674_s1  ;;  %p2679_p0 = scmp.lt.s32.totalorder %s54_s19, %s54_s19 }
  0x3f   :  { %p2680_p1 = scmp.lt.s32.totalorder %s2678_s13, %s2674_s1 }
  0x41   :  { %p2681_p2 = por %p2680_p1, %p2679_p0 }
  0x43   :  { %p2682_p3 = pnand %p2681_p2, %p2675_p13 }
  0x45   :  { %2685 = shalt.err (!%p2682_p3)
}
  0x46   :  { %56 = dma.hbm_to_vmem [thread:$0]  %s3275_s3, 16, %s54_s19, [#allocation9]  }
  0x47   :  { %2708 = dma.done.wait [#allocation3], 16384  }
  0x48   :  { %2709 = vsyncadd [#allocation3], 4294950912 }
  0x49   :  { %2710 = dma.done.wait [#allocation6], 144  }
  0x4a   :  { %2711 = vsyncadd [#allocation6], 4294967152 }
  0x4b   :  { %2712 = dma.done.wait [#allocation9], 16  }
  0x4c   :  { %2713 = vsyncadd [#allocation9], 4294967280  ;;  %v2595_v0 = vld [vmem:[#allocation5] sm:$0xff]   ;;  %v71_v2 = vld [vmem:[#allocation2 + $0x8] sm:$0xff]  ;;  %vm270_vm0 = vcmask 130048   ;;  %vm1918_vm1 = vcmask 27648  }
  0x4d   :  { %v70_v1 = vld [vmem:[#allocation2] sm:$0xff]  ;;  %2454 = vmatprep.subr.bf16.mxu0 %v2595_v0  ;;  %2584 = vmatprep.subr.bf16.mxu1 %v2595_v0  ;;  %v135_v5 = vld [vmem:[#allocation2 + $0x208] sm:$0xff]  ;;  %v72_v6 = vld [vmem:[#allocation2 + $0x10] sm:$0xff]  ;;  %s2724_s3 = smov [#allocation10]  }
  0x4e   :  { %v134_v3 = vld [vmem:[#allocation2 + $0x200] sm:$0xff]  ;;  %v198_v4 = vpack.c.bf16 %v71_v2, %v70_v1  ;;  %v73_v7 = vld [vmem:[#allocation2 + $0x18] sm:$0xff]  ;;  %2455 = vmatpush3.bf16.msra.mxu0 %v2595_v0  ;;  %2585 = vmatpush3.bf16.msra.mxu1 %v2595_v0  ;;  %v136_v10 = vld [vmem:[#allocation2 + $0x210] sm:$0xff]  ;;  %s2052_s15 = sshll.u32 %s2724_s3, 4  ;;  %s2053_s15 = int_to_ptr.vmem [resolvable:$true] %s2052_s15 }
  0x4f   :  { %v230_v8 = vpack.c.bf16 %v135_v5, %v134_v3  ;;  %v199_v9 = vpack.c.bf16 %v73_v7, %v72_v6  ;;  %v137_v11 = vld [vmem:[#allocation2 + $0x218] sm:$0xff]  ;;  %v74_v12 = vld [vmem:[#allocation2 + $0x20] sm:$0xff]  ;;  %v75_v14 = vld [vmem:[#allocation2 + $0x28] sm:$0xff]  ;;  %s2686_s16 = scalar_lea.vmem %s2053_s15, 8192  ;;  %p2691_p5 = scmp.lt.s32.totalorder %s2053_s15, %s2053_s15 }
  0x50   :  { %2456 = vmatprep.mubr.msk.bf16.mxu0 %vm270_vm0, %v198_v4  ;;  %v231_v13 = vpack.c.bf16 %v137_v11, %v136_v10  ;;  %v138_v15 = vld [vmem:[#allocation2 + $0x220] sm:$0xff]  ;;  %v139_v16 = vld [vmem:[#allocation2 + $0x228] sm:$0xff]  ;;  %v200_v17 = vpack.c.bf16 %v75_v14, %v74_v12  ;;  %v76_v19 = vld [vmem:[#allocation2 + $0x30] sm:$0xff]  ;;  %p2687_p4 = scmp.ne.s32.totalorder %s2053_s15, %s2686_s16  ;;  %p2692_p6 = scmp.lt.s32.totalorder %s2686_s16, %s2686_s16 }
  0x51   :  { %2520 = vmatprep.mubr.msk.bf16.mxu1 %vm270_vm0, %v230_v8  ;;  %v232_v18 = vpack.c.bf16 %v139_v16, %v138_v15  ;;  %2457 = vmatmul.mubr.msk.bf16.vlgmr.msra.gmra.mrb[0].mxu0 %vm270_vm0, %v199_v9  ;;  %v77_v20 = vld [vmem:[#allocation2 + $0x38] sm:$0xff]  ;;  %v140_v21 = vld [vmem:[#allocation2 + $0x230] sm:$0xff]  ;;  %v78_v23 = vld [vmem:[#allocation2 + $0x40] sm:$0xff] }
  0x52   :  { %2521 = vmatmul.mubr.msk.bf16.vlgmr.msra.gmra.mrb[0].mxu1 %vm270_vm0, %v231_v13  ;;  %2460 = vmatprep.mubr.msk.bf16.mxu0 %vm270_vm0, %v200_v17  ;;  %v141_v22 = vld [vmem:[#allocation2 + $0x238] sm:$0xff]  ;;  %v79_v24 = vld [vmem:[#allocation2 + $0x48] sm:$0xff]  ;;  %v142_v25 = vld [vmem:[#allocation2 + $0x240] sm:$0xff]  ;;  %v201_v27 = vpack.c.bf16 %v77_v20, %v76_v19  ;;  %p2693_p7 = por %p2692_p6, %p2691_p5 }
  0x53   :  { %2524 = vmatprep.mubr.msk.bf16.mxu1 %vm270_vm0, %v232_v18  ;;  %v143_v26 = vld [vmem:[#allocation2 + $0x248] sm:$0xff]  ;;  %v233_v28 = vpack.c.bf16 %v141_v22, %v140_v21  ;;  %v202_v29 = vpack.c.bf16 %v79_v24, %v78_v23  ;;  %v80_v31 = vld [vmem:[#allocation2 + $0x50] sm:$0xff]  ;;  %v81_v32 = vld [vmem:[#allocation2 + $0x58] sm:$0xff] }
  0x54   :  { %v234_v30 = vpack.c.bf16 %v143_v26, %v142_v25  ;;  %v144_v33 = vld [vmem:[#allocation2 + $0x250] sm:$0xff]  ;;  %v145_v34 = vld [vmem:[#allocation2 + $0x258] sm:$0xff]  ;;  %v82_v35 = vld [vmem:[#allocation2 + $0x60] sm:$0xff]  ;;  %v203_v39 = vpack.c.bf16 %v81_v32, %v80_v31  ;;  %p2694_p8 = pnand %p2693_p7, %p2687_p4 }
  0x55   :  { %v83_v36 = vld [vmem:[#allocation2 + $0x68] sm:$0xff]  ;;  %v146_v37 = vld [vmem:[#allocation2 + $0x260] sm:$0xff]  ;;  %v235_v40 = vpack.c.bf16 %v145_v34, %v144_v33  ;;  %v84_v43 = vld [vmem:[#allocation2 + $0x70] sm:$0xff] }
  0x56   :  { %v147_v38 = vld [vmem:[#allocation2 + $0x268] sm:$0xff]  ;;  %v204_v41 = vpack.c.bf16 %v83_v36, %v82_v35  ;;  %v85_v44 = vld [vmem:[#allocation2 + $0x78] sm:$0xff]  ;;  %v148_v45 = vld [vmem:[#allocation2 + $0x270] sm:$0xff] }
  0x57   :  { %v236_v42 = vpack.c.bf16 %v147_v38, %v146_v37  ;;  %v149_v46 = vld [vmem:[#allocation2 + $0x278] sm:$0xff]  ;;  %v86_v47 = vld [vmem:[#allocation2 + $0x80] sm:$0xff]  ;;  %v87_v48 = vld [vmem:[#allocation2 + $0x88] sm:$0xff]  ;;  %v205_v51 = vpack.c.bf16 %v85_v44, %v84_v43 }
  0x58   :  { %v150_v49 = vld [vmem:[#allocation2 + $0x280] sm:$0xff]  ;;  %v151_v50 = vld [vmem:[#allocation2 + $0x288] sm:$0xff]  ;;  %v237_v52 = vpack.c.bf16 %v149_v46, %v148_v45  ;;  %v206_v53 = vpack.c.bf16 %v87_v48, %v86_v47  ;;  %v88_v55 = vld [vmem:[#allocation2 + $0x90] sm:$0xff] }
  0x59   :  { %2461 = vmatmul.mubr.msk.bf16.gmra.mrb[4].mxu0 %vm270_vm0, %v201_v27  ;;  %v238_v54 = vpack.c.bf16 %v151_v50, %v150_v49  ;;  %v89_v56 = vld [vmem:[#allocation2 + $0x98] sm:$0xff]  ;;  %v152_v57 = vld [vmem:[#allocation2 + $0x290] sm:$0xff]  ;;  %v90_v59 = vld [vmem:[#allocation2 + $0xa0] sm:$0xff] }
  0x5a   :  { %2525 = vmatmul.mubr.msk.bf16.gmra.mrb[4].mxu1 %vm270_vm0, %v233_v28  ;;  %2464 = vmatprep.mubr.msk.bf16.mxu0 %vm270_vm0, %v202_v29  ;;  %v153_v58 = vld [vmem:[#allocation2 + $0x298] sm:$0xff]  ;;  %v91_v60 = vld [vmem:[#allocation2 + $0xa8] sm:$0xff]  ;;  %v154_v61 = vld [vmem:[#allocation2 + $0x2a0] sm:$0xff]  ;;  %v207_v63 = vpack.c.bf16 %v89_v56, %v88_v55 }
  0x5b   :  { %2528 = vmatprep.mubr.msk.bf16.mxu1 %vm270_vm0, %v234_v30  ;;  %v155_v62 = vld [vmem:[#allocation2 + $0x2a8] sm:$0xff]  ;;  %v239_v0 = vpack.c.bf16 %v153_v58, %v152_v57  ;;  %v208_v1 = vpack.c.bf16 %v91_v60, %v90_v59  ;;  %v92_v3 = vld [vmem:[#allocation2 + $0xb0] sm:$0xff]  ;;  %v93_v4 = vld [vmem:[#allocation2 + $0xb8] sm:$0xff] }
  0x5c   :  { %v240_v2 = vpack.c.bf16 %v155_v62, %v154_v61  ;;  %v156_v5 = vld [vmem:[#allocation2 + $0x2b0] sm:$0xff]  ;;  %v157_v6 = vld [vmem:[#allocation2 + $0x2b8] sm:$0xff]  ;;  %v94_v7 = vld [vmem:[#allocation2 + $0xc0] sm:$0xff]  ;;  %v209_v11 = vpack.c.bf16 %v93_v4, %v92_v3 }
  0x5d   :  { %v95_v8 = vld [vmem:[#allocation2 + $0xc8] sm:$0xff]  ;;  %v158_v9 = vld [vmem:[#allocation2 + $0x2c0] sm:$0xff]  ;;  %v241_v12 = vpack.c.bf16 %v157_v6, %v156_v5  ;;  %v96_v15 = vld [vmem:[#allocation2 + $0xd0] sm:$0xff] }
  0x5e   :  { %v159_v10 = vld [vmem:[#allocation2 + $0x2c8] sm:$0xff]  ;;  %v210_v13 = vpack.c.bf16 %v95_v8, %v94_v7  ;;  %v97_v16 = vld [vmem:[#allocation2 + $0xd8] sm:$0xff]  ;;  %v160_v17 = vld [vmem:[#allocation2 + $0x2d0] sm:$0xff] }
  0x5f   :  { %v242_v14 = vpack.c.bf16 %v159_v10, %v158_v9  ;;  %v161_v18 = vld [vmem:[#allocation2 + $0x2d8] sm:$0xff]  ;;  %v98_v19 = vld [vmem:[#allocation2 + $0xe0] sm:$0xff]  ;;  %v99_v20 = vld [vmem:[#allocation2 + $0xe8] sm:$0xff]  ;;  %v211_v23 = vpack.c.bf16 %v97_v16, %v96_v15 }
  0x60   :  { %v162_v21 = vld [vmem:[#allocation2 + $0x2e0] sm:$0xff]  ;;  %v163_v22 = vld [vmem:[#allocation2 + $0x2e8] sm:$0xff]  ;;  %v243_v24 = vpack.c.bf16 %v161_v18, %v160_v17  ;;  %v212_v25 = vpack.c.bf16 %v99_v20, %v98_v19  ;;  %v100_v27 = vld [vmem:[#allocation2 + $0xf0] sm:$0xff] }
  0x61   :  { %2465 = vmatmul.mubr.msk.bf16.gmra.mrb[8].mxu0 %vm270_vm0, %v203_v39  ;;  %v244_v26 = vpack.c.bf16 %v163_v22, %v162_v21  ;;  %v101_v28 = vld [vmem:[#allocation2 + $0xf8] sm:$0xff]  ;;  %v164_v29 = vld [vmem:[#allocation2 + $0x2f0] sm:$0xff]  ;;  %v102_v31 = vld [vmem:[#allocation2 + $0x100] sm:$0xff] }
  0x62   :  { %2529 = vmatmul.mubr.msk.bf16.gmra.mrb[8].mxu1 %vm270_vm0, %v235_v40  ;;  %2468 = vmatprep.mubr.msk.bf16.mxu0 %vm270_vm0, %v204_v41  ;;  %v165_v30 = vld [vmem:[#allocation2 + $0x2f8] sm:$0xff]  ;;  %v103_v32 = vld [vmem:[#allocation2 + $0x108] sm:$0xff]  ;;  %v166_v33 = vld [vmem:[#allocation2 + $0x300] sm:$0xff]  ;;  %v213_v35 = vpack.c.bf16 %v101_v28, %v100_v27 }
  0x63   :  { %2532 = vmatprep.mubr.msk.bf16.mxu1 %vm270_vm0, %v236_v42  ;;  %v167_v34 = vld [vmem:[#allocation2 + $0x308] sm:$0xff]  ;;  %v245_v36 = vpack.c.bf16 %v165_v30, %v164_v29  ;;  %v214_v37 = vpack.c.bf16 %v103_v32, %v102_v31  ;;  %v104_v39 = vld [vmem:[#allocation2 + $0x110] sm:$0xff]  ;;  %v105_v40 = vld [vmem:[#allocation2 + $0x118] sm:$0xff] }
  0x64   :  { %v246_v38 = vpack.c.bf16 %v167_v34, %v166_v33  ;;  %v168_v41 = vld [vmem:[#allocation2 + $0x310] sm:$0xff]  ;;  %v169_v42 = vld [vmem:[#allocation2 + $0x318] sm:$0xff]  ;;  %v106_v43 = vld [vmem:[#allocation2 + $0x120] sm:$0xff]  ;;  %v215_v47 = vpack.c.bf16 %v105_v40, %v104_v39 }
  0x65   :  { %v107_v44 = vld [vmem:[#allocation2 + $0x128] sm:$0xff]  ;;  %v170_v45 = vld [vmem:[#allocation2 + $0x320] sm:$0xff]  ;;  %v247_v48 = vpack.c.bf16 %v169_v42, %v168_v41 }
  0x66   :  { %v171_v46 = vld [vmem:[#allocation2 + $0x328] sm:$0xff]  ;;  %v216_v49 = vpack.c.bf16 %v107_v44, %v106_v43  ;;  %v110_v55 = vld [vmem:[#allocation2 + $0x140] sm:$0xff] }
  0x67   :  { %v248_v50 = vpack.c.bf16 %v171_v46, %v170_v45  ;;  %v111_v56 = vld [vmem:[#allocation2 + $0x148] sm:$0xff]  ;;  %v174_v57 = vld [vmem:[#allocation2 + $0x340] sm:$0xff] }
  0x68   :  { %v175_v58 = vld [vmem:[#allocation2 + $0x348] sm:$0xff]  ;;  %v218_v61 = vpack.c.bf16 %v111_v56, %v110_v55  ;;  %v114_v3 = vld [vmem:[#allocation2 + $0x160] sm:$0xff] }
  0x69   :  { %2469 = vmatmul.mubr.msk.bf16.gmra.mrb[12].mxu0 %vm270_vm0, %v205_v51  ;;  %v108_v51 = vld [vmem:[#allocation2 + $0x130] sm:$0xff]  ;;  %v250_v62 = vpack.c.bf16 %v175_v58, %v174_v57  ;;  %v115_v4 = vld [vmem:[#allocation2 + $0x168] sm:$0xff]  ;;  %v178_v5 = vld [vmem:[#allocation2 + $0x360] sm:$0xff] }
  0x6a   :  { %2533 = vmatmul.mubr.msk.bf16.gmra.mrb[12].mxu1 %vm270_vm0, %v237_v52  ;;  %2472 = vmatprep.mubr.msk.bf16.mxu0 %vm270_vm0, %v206_v53  ;;  %v109_v52 = vld [vmem:[#allocation2 + $0x138] sm:$0xff]  ;;  %v172_v53 = vld [vmem:[#allocation2 + $0x330] sm:$0xff]  ;;  %v179_v6 = vld [vmem:[#allocation2 + $0x368] sm:$0xff]  ;;  %v220_v9 = vpack.c.bf16 %v115_v4, %v114_v3 }
  0x6b   :  { %2536 = vmatprep.mubr.msk.bf16.mxu1 %vm270_vm0, %v238_v54  ;;  %v173_v54 = vld [vmem:[#allocation2 + $0x338] sm:$0xff]  ;;  %v217_v59 = vpack.c.bf16 %v109_v52, %v108_v51  ;;  %v252_v10 = vpack.c.bf16 %v179_v6, %v178_v5  ;;  %v118_v15 = vld [vmem:[#allocation2 + $0x180] sm:$0xff]  ;;  %v119_v16 = vld [vmem:[#allocation2 + $0x188] sm:$0xff] }
  0x6c   :  { %v249_v60 = vpack.c.bf16 %v173_v54, %v172_v53  ;;  %v182_v17 = vld [vmem:[#allocation2 + $0x380] sm:$0xff]  ;;  %v183_v18 = vld [vmem:[#allocation2 + $0x388] sm:$0xff]  ;;  %v222_v21 = vpack.c.bf16 %v119_v16, %v118_v15 }
  0x6d   :  { %v254_v22 = vpack.c.bf16 %v183_v18, %v182_v17  ;;  %v122_v27 = vld [vmem:[#allocation2 + $0x1a0] sm:$0xff]  ;;  %v123_v28 = vld [vmem:[#allocation2 + $0x1a8] sm:$0xff] }
  0x6e   :  { %v186_v29 = vld [vmem:[#allocation2 + $0x3a0] sm:$0xff]  ;;  %v187_v30 = vld [vmem:[#allocation2 + $0x3a8] sm:$0xff]  ;;  %v224_v33 = vpack.c.bf16 %v123_v28, %v122_v27 }
  0x6f   :  { %v256_v34 = vpack.c.bf16 %v187_v30, %v186_v29  ;;  %v126_v39 = vld [vmem:[#allocation2 + $0x1c0] sm:$0xff]  ;;  %v127_v40 = vld [vmem:[#allocation2 + $0x1c8] sm:$0xff] }
  0x70   :  { %v190_v41 = vld [vmem:[#allocation2 + $0x3c0] sm:$0xff]  ;;  %v191_v42 = vld [vmem:[#allocation2 + $0x3c8] sm:$0xff]  ;;  %v226_v45 = vpack.c.bf16 %v127_v40, %v126_v39 }
  0x71   :  { %2473 = vmatmul.mubr.msk.bf16.gmra.mrb[16].mxu0 %vm270_vm0, %v207_v63  ;;  %v112_v63 = vld [vmem:[#allocation2 + $0x150] sm:$0xff]  ;;  %v258_v46 = vpack.c.bf16 %v191_v42, %v190_v41  ;;  %v130_v51 = vld [vmem:[#allocation2 + $0x1e0] sm:$0xff]  ;;  %v131_v52 = vld [vmem:[#allocation2 + $0x1e8] sm:$0xff] }
  0x72   :  { %2537 = vmatmul.mubr.msk.bf16.gmra.mrb[16].mxu1 %vm270_vm0, %v239_v0  ;;  %2476 = vmatprep.mubr.msk.bf16.mxu0 %vm270_vm0, %v208_v1  ;;  %v113_v0 = vld [vmem:[#allocation2 + $0x158] sm:$0xff]  ;;  %v176_v1 = vld [vmem:[#allocation2 + $0x350] sm:$0xff]  ;;  %v194_v53 = vld [vmem:[#allocation2 + $0x3e0] sm:$0xff]  ;;  %v228_v57 = vpack.c.bf16 %v131_v52, %v130_v51 }
  0x73   :  { %2540 = vmatprep.mubr.msk.bf16.mxu1 %vm270_vm0, %v240_v2  ;;  %v177_v2 = vld [vmem:[#allocation2 + $0x358] sm:$0xff]  ;;  %v219_v7 = vpack.c.bf16 %v113_v0, %v112_v63  ;;  %v195_v54 = vld [vmem:[#allocation2 + $0x3e8] sm:$0xff] }
  0x74   :  { %v251_v8 = vpack.c.bf16 %v177_v2, %v176_v1  ;;  %v260_v58 = vpack.c.bf16 %v195_v54, %v194_v53  ;;  %v2865_v1 = vld [vmem:[#allocation7] ss:$0 sm:$0xff]  ;;  %v2867_v3 = vld [vmem:[#allocation8] ss:$0 sm:$0xff] }
  0x79   :  { %2477 = vmatmul.mubr.msk.bf16.gmra.mrb[20].mxu0 %vm270_vm0, %v209_v11  ;;  %v116_v11 = vld [vmem:[#allocation2 + $0x170] sm:$0xff] }
  0x7a   :  { %2541 = vmatmul.mubr.msk.bf16.gmra.mrb[20].mxu1 %vm270_vm0, %v241_v12  ;;  %2480 = vmatprep.mubr.msk.bf16.mxu0 %vm270_vm0, %v210_v13  ;;  %v117_v12 = vld [vmem:[#allocation2 + $0x178] sm:$0xff]  ;;  %v180_v13 = vld [vmem:[#allocation2 + $0x370] sm:$0xff] }
  0x7b   :  { %2544 = vmatprep.mubr.msk.bf16.mxu1 %vm270_vm0, %v242_v14  ;;  %v181_v14 = vld [vmem:[#allocation2 + $0x378] sm:$0xff]  ;;  %v221_v19 = vpack.c.bf16 %v117_v12, %v116_v11 }
  0x7c   :  { %v253_v20 = vpack.c.bf16 %v181_v14, %v180_v13 }
  0x81   :  { %2481 = vmatmul.mubr.msk.bf16.gmra.mrb[24].mxu0 %vm270_vm0, %v211_v23  ;;  %v120_v23 = vld [vmem:[#allocation2 + $0x190] sm:$0xff] }
  0x82   :  { %2545 = vmatmul.mubr.msk.bf16.gmra.mrb[24].mxu1 %vm270_vm0, %v243_v24  ;;  %2484 = vmatprep.mubr.msk.bf16.mxu0 %vm270_vm0, %v212_v25  ;;  %v121_v24 = vld [vmem:[#allocation2 + $0x198] sm:$0xff]  ;;  %v184_v25 = vld [vmem:[#allocation2 + $0x390] sm:$0xff] }
  0x83   :  { %2548 = vmatprep.mubr.msk.bf16.mxu1 %vm270_vm0, %v244_v26  ;;  %v185_v26 = vld [vmem:[#allocation2 + $0x398] sm:$0xff]  ;;  %v223_v31 = vpack.c.bf16 %v121_v24, %v120_v23 }
  0x84   :  { %v255_v32 = vpack.c.bf16 %v185_v26, %v184_v25 }
  0x89   :  { %2485 = vmatmul.mubr.msk.bf16.gmra.mrb[28].mxu0 %vm270_vm0, %v213_v35  ;;  %v124_v35 = vld [vmem:[#allocation2 + $0x1b0] sm:$0xff] }
  0x8a   :  { %2549 = vmatmul.mubr.msk.bf16.gmra.mrb[28].mxu1 %vm270_vm0, %v245_v36  ;;  %2488 = vmatprep.mubr.msk.bf16.mxu0 %vm270_vm0, %v214_v37  ;;  %v125_v36 = vld [vmem:[#allocation2 + $0x1b8] sm:$0xff]  ;;  %v188_v37 = vld [vmem:[#allocation2 + $0x3b0] sm:$0xff] }
  0x8b   :  { %2552 = vmatprep.mubr.msk.bf16.mxu1 %vm270_vm0, %v246_v38  ;;  %v189_v38 = vld [vmem:[#allocation2 + $0x3b8] sm:$0xff]  ;;  %v225_v43 = vpack.c.bf16 %v125_v36, %v124_v35 }
  0x8c   :  { %v257_v44 = vpack.c.bf16 %v189_v38, %v188_v37 }
  0x91   :  { %2489 = vmatmul.mubr.msk.bf16.gmra.mrb[32].mxu0 %vm270_vm0, %v215_v47  ;;  %v128_v47 = vld [vmem:[#allocation2 + $0x1d0] sm:$0xff] }
  0x92   :  { %2553 = vmatmul.mubr.msk.bf16.gmra.mrb[32].mxu1 %vm270_vm0, %v247_v48  ;;  %2492 = vmatprep.mubr.msk.bf16.mxu0 %vm270_vm0, %v216_v49  ;;  %v129_v48 = vld [vmem:[#allocation2 + $0x1d8] sm:$0xff]  ;;  %v192_v49 = vld [vmem:[#allocation2 + $0x3d0] sm:$0xff] }
  0x93   :  { %2556 = vmatprep.mubr.msk.bf16.mxu1 %vm270_vm0, %v248_v50  ;;  %v193_v50 = vld [vmem:[#allocation2 + $0x3d8] sm:$0xff]  ;;  %v227_v55 = vpack.c.bf16 %v129_v48, %v128_v47 }
  0x94   :  { %v259_v56 = vpack.c.bf16 %v193_v50, %v192_v49 }
  0x99   :  { %2493 = vmatmul.mubr.msk.bf16.gmra.mrb[36].mxu0 %vm270_vm0, %v217_v59  ;;  %v132_v59 = vld [vmem:[#allocation2 + $0x1f0] sm:$0xff] }
  0x9a   :  { %2557 = vmatmul.mubr.msk.bf16.gmra.mrb[36].mxu1 %vm270_vm0, %v249_v60  ;;  %2496 = vmatprep.mubr.msk.bf16.mxu0 %vm270_vm0, %v218_v61  ;;  %v133_v60 = vld [vmem:[#allocation2 + $0x1f8] sm:$0xff]  ;;  %v196_v61 = vld [vmem:[#allocation2 + $0x3f0] sm:$0xff] }
  0x9b   :  { %2560 = vmatprep.mubr.msk.bf16.mxu1 %vm270_vm0, %v250_v62  ;;  %v197_v62 = vld [vmem:[#allocation2 + $0x3f8] sm:$0xff]  ;;  %v229_v63 = vpack.c.bf16 %v133_v60, %v132_v59 }
  0x9c   :  { %v261_v0 = vpack.c.bf16 %v197_v62, %v196_v61 }
  0xa1   :  { %2497 = vmatmul.mubr.msk.bf16.gmra.mrb[40].mxu0 %vm270_vm0, %v219_v7 }
  0xa2   :  { %2561 = vmatmul.mubr.msk.bf16.gmra.mrb[40].mxu1 %vm270_vm0, %v251_v8  ;;  %2500 = vmatprep.mubr.msk.bf16.mxu0 %vm270_vm0, %v220_v9 }
  0xa3   :  { %2564 = vmatprep.mubr.msk.bf16.mxu1 %vm270_vm0, %v252_v10 }
  0xa9   :  { %2501 = vmatmul.mubr.msk.bf16.gmra.mrb[44].mxu0 %vm270_vm0, %v221_v19 }
  0xaa   :  { %2565 = vmatmul.mubr.msk.bf16.gmra.mrb[44].mxu1 %vm270_vm0, %v253_v20  ;;  %2504 = vmatprep.mubr.msk.bf16.mxu0 %vm270_vm0, %v222_v21 }
  0xab   :  { %2568 = vmatprep.mubr.msk.bf16.mxu1 %vm270_vm0, %v254_v22 }
  0xb1   :  { %2505 = vmatmul.mubr.msk.bf16.gmra.mrb[48].mxu0 %vm270_vm0, %v223_v31 }
  0xb2   :  { %2569 = vmatmul.mubr.msk.bf16.gmra.mrb[48].mxu1 %vm270_vm0, %v255_v32  ;;  %2508 = vmatprep.mubr.msk.bf16.mxu0 %vm270_vm0, %v224_v33 }
  0xb3   :  { %2572 = vmatprep.mubr.msk.bf16.mxu1 %vm270_vm0, %v256_v34 }
  0xb9   :  { %2509 = vmatmul.mubr.msk.bf16.gmra.mrb[52].mxu0 %vm270_vm0, %v225_v43 }
  0xba   :  { %2573 = vmatmul.mubr.msk.bf16.gmra.mrb[52].mxu1 %vm270_vm0, %v257_v44  ;;  %2512 = vmatprep.mubr.msk.bf16.mxu0 %vm270_vm0, %v226_v45 }
  0xbb   :  { %2576 = vmatprep.mubr.msk.bf16.mxu1 %vm270_vm0, %v258_v46 }
  0xc1   :  { %2513 = vmatmul.mubr.msk.bf16.gmra.mrb[56].mxu0 %vm270_vm0, %v227_v55 }
  0xc2   :  { %2577 = vmatmul.mubr.msk.bf16.gmra.mrb[56].mxu1 %vm270_vm0, %v259_v56  ;;  %2516 = vmatprep.mubr.msk.bf16.mxu0 %vm270_vm0, %v228_v57 }
  0xc3   :  { %2580 = vmatprep.mubr.msk.bf16.mxu1 %vm270_vm0, %v260_v58 }
  0xc9   :  { %2517 = vmatmul.mubr.msk.bf16.gmra.mrb[60].mxu0 %vm270_vm0, %v229_v63 }
  0xca   :  { %2581 = vmatmul.mubr.msk.bf16.gmra.mrb[60].mxu1 %vm270_vm0, %v261_v0 }
 0x124   :  { %v2458_v2 = vpop.f32.mrb[0].mxu0 }
 0x125   :  { %v2522_v4 = vpop.f32.mrb[0].mxu1  ;;  %v1017_v5 = vmul.f32 %v2458_v2, %v2865_v1  ;;  %v497_v7 = vpop.f32.mrb[1].mxu0 }
 0x126   :  { %v1081_v6 = vmul.f32 %v2522_v4, %v2865_v1  ;;  %v753_v8 = vpop.f32.mrb[1].mxu1  ;;  %v1015_v9 = vmul.f32 %v2865_v1, %v497_v7  ;;  %v2459_v11 = vpop.f32.mrb[2].mxu0 }
 0x127   :  { %v1079_v10 = vmul.f32 %v2865_v1, %v753_v8  ;;  %v2523_v12 = vpop.f32.mrb[2].mxu1  ;;  %v1152_v13 = vadd.f32 %v2867_v3, %v1017_v5  ;;  %v1018_v15 = vmul.f32 %v2459_v11, %v2865_v1  ;;  %v500_v17 = vpop.f32.mrb[3].mxu0 }
 0x128   :  { %v1216_v14 = vadd.f32 %v2867_v3, %v1081_v6  ;;  %v1082_v16 = vmul.f32 %v2523_v12, %v2865_v1  ;;  %v756_v18 = vpop.f32.mrb[3].mxu1  ;;  %v1150_v19 = vadd.f32 %v2867_v3, %v1015_v9  ;;  %v1016_v21 = vmul.f32 %v2865_v1, %v500_v17 }
 0x129   :  { %v1214_v20 = vadd.f32 %v2867_v3, %v1079_v10  ;;  %v1080_v22 = vmul.f32 %v2865_v1, %v756_v18  ;;  %v1280_v23 = vmax.f32 %v1152_v13, 0.0  ;;  %v1153_v25 = vadd.f32 %v2867_v3, %v1018_v15 }
 0x12a   :  { %v1344_v24 = vmax.f32 %v1216_v14, 0.0  ;;  %v1217_v26 = vadd.f32 %v2867_v3, %v1082_v16  ;;  %v1278_v27 = vmax.f32 %v1150_v19, 0.0  ;;  %v1151_v29 = vadd.f32 %v2867_v3, %v1016_v21 }
 0x12b   :  { %v1342_v28 = vmax.f32 %v1214_v20, 0.0  ;;  %v1215_v30 = vadd.f32 %v2867_v3, %v1080_v22  ;;  %v2263_v31 = vpack.c.bf16 %v1280_v23, %v1280_v23  ;;  %v1281_v33 = vmax.f32 %v1153_v25, 0.0 }
 0x12c   :  { %v2327_v32 = vpack.c.bf16 %v1344_v24, %v1344_v24  ;;  %v1345_v34 = vmax.f32 %v1217_v26, 0.0  ;;  %v2261_v35 = vpack.c.bf16 %v1278_v27, %v1278_v27  ;;  %v1279_v37 = vmax.f32 %v1151_v29, 0.0  ;;  %v2462_v39 = vpop.f32.mrb[4].mxu0 }
 0x12d   :  { %v2325_v36 = vpack.c.bf16 %v1342_v28, %v1342_v28  ;;  %v1343_v38 = vmax.f32 %v1215_v30, 0.0  ;;  %v2526_v40 = vpop.f32.mrb[4].mxu1  ;;  %1921 = vst.msk [vmem:[#allocation10 + $0x8] sm:$0xf] %vm1918_vm1, %v2263_v31  ;;  %v2264_v41 = vpack.c.bf16 %v1281_v33, %v1281_v33  ;;  %v1021_v43 = vmul.f32 %v2462_v39, %v2865_v1  ;;  %v513_v45 = vpop.f32.mrb[5].mxu0 }
 0x12e   :  { %1985 = vst.msk [vmem:[#allocation10 + $0x108] sm:$0xf] %vm1918_vm1, %v2327_v32  ;;  %v2328_v42 = vpack.c.bf16 %v1345_v34, %v1345_v34  ;;  %v1085_v44 = vmul.f32 %v2526_v40, %v2865_v1  ;;  %v769_v46 = vpop.f32.mrb[5].mxu1  ;;  %1919 = vst.msk [vmem:[#allocation10] sm:$0xf] %vm1918_vm1, %v2261_v35  ;;  %v2262_v47 = vpack.c.bf16 %v1279_v37, %v1279_v37  ;;  %v2463_v51 = vpop.f32.mrb[6].mxu0 }
 0x12f   :  { %1983 = vst.msk [vmem:[#allocation10 + $0x100] sm:$0xf] %vm1918_vm1, %v2325_v36  ;;  %v2326_v48 = vpack.c.bf16 %v1343_v38, %v1343_v38  ;;  %v1019_v49 = vmul.f32 %v2865_v1, %v513_v45  ;;  %v1083_v50 = vmul.f32 %v2865_v1, %v769_v46  ;;  %v2527_v52 = vpop.f32.mrb[6].mxu1  ;;  %1922 = vst.msk [vmem:[#allocation10 + $0xc] sm:$0xf] %vm1918_vm1, %v2264_v41  ;;  %v516_v57 = vpop.f32.mrb[7].mxu0 }
 0x130   :  { %1986 = vst.msk [vmem:[#allocation10 + $0x10c] sm:$0xf] %vm1918_vm1, %v2328_v42  ;;  %v1156_v53 = vadd.f32 %v2867_v3, %v1021_v43  ;;  %v1220_v54 = vadd.f32 %v2867_v3, %v1085_v44  ;;  %v1022_v55 = vmul.f32 %v2463_v51, %v2865_v1  ;;  %v1086_v56 = vmul.f32 %v2527_v52, %v2865_v1  ;;  %v772_v58 = vpop.f32.mrb[7].mxu1 }
 0x131   :  { %1920 = vst.msk [vmem:[#allocation10 + $0x4] sm:$0xf] %vm1918_vm1, %v2262_v47  ;;  %1984 = vst.msk [vmem:[#allocation10 + $0x104] sm:$0xf] %vm1918_vm1, %v2326_v48  ;;  %v1154_v59 = vadd.f32 %v2867_v3, %v1019_v49  ;;  %v1218_v60 = vadd.f32 %v2867_v3, %v1083_v50  ;;  %v1020_v61 = vmul.f32 %v2865_v1, %v516_v57 }
 0x132   :  { %v1084_v62 = vmul.f32 %v2865_v1, %v772_v58  ;;  %v1284_v63 = vmax.f32 %v1156_v53, 0.0  ;;  %v1348_v0 = vmax.f32 %v1220_v54, 0.0  ;;  %v1157_v2 = vadd.f32 %v2867_v3, %v1022_v55 }
 0x133   :  { %v1221_v4 = vadd.f32 %v2867_v3, %v1086_v56  ;;  %v1282_v5 = vmax.f32 %v1154_v59, 0.0  ;;  %v1346_v6 = vmax.f32 %v1218_v60, 0.0  ;;  %v1155_v7 = vadd.f32 %v2867_v3, %v1020_v61 }
 0x134   :  { %v1219_v8 = vadd.f32 %v2867_v3, %v1084_v62  ;;  %v2267_v9 = vpack.c.bf16 %v1284_v63, %v1284_v63  ;;  %v2331_v10 = vpack.c.bf16 %v1348_v0, %v1348_v0  ;;  %v1285_v11 = vmax.f32 %v1157_v2, 0.0  ;;  %v2466_v17 = vpop.f32.mrb[8].mxu0 }
 0x135   :  { %v1349_v12 = vmax.f32 %v1221_v4, 0.0  ;;  %v2265_v13 = vpack.c.bf16 %v1282_v5, %v1282_v5  ;;  %v2329_v14 = vpack.c.bf16 %v1346_v6, %v1346_v6  ;;  %v1283_v15 = vmax.f32 %v1155_v7, 0.0  ;;  %v2530_v18 = vpop.f32.mrb[8].mxu1  ;;  %v529_v23 = vpop.f32.mrb[9].mxu0 }
 0x136   :  { %v1347_v16 = vmax.f32 %v1219_v8, 0.0  ;;  %1925 = vst.msk [vmem:[#allocation10 + $0x18] sm:$0xf] %vm1918_vm1, %v2267_v9  ;;  %1989 = vst.msk [vmem:[#allocation10 + $0x118] sm:$0xf] %vm1918_vm1, %v2331_v10  ;;  %v2268_v19 = vpack.c.bf16 %v1285_v11, %v1285_v11  ;;  %v1025_v21 = vmul.f32 %v2466_v17, %v2865_v1  ;;  %v1089_v22 = vmul.f32 %v2530_v18, %v2865_v1  ;;  %v785_v24 = vpop.f32.mrb[9].mxu1 }
 0x137   :  { %v2332_v20 = vpack.c.bf16 %v1349_v12, %v1349_v12  ;;  %1923 = vst.msk [vmem:[#allocation10 + $0x10] sm:$0xf] %vm1918_vm1, %v2265_v13  ;;  %1987 = vst.msk [vmem:[#allocation10 + $0x110] sm:$0xf] %vm1918_vm1, %v2329_v14  ;;  %v2266_v25 = vpack.c.bf16 %v1283_v15, %v1283_v15  ;;  %v1023_v27 = vmul.f32 %v2865_v1, %v529_v23  ;;  %v2467_v29 = vpop.f32.mrb[10].mxu0  ;;  %v2531_v30 = vpop.f32.mrb[10].mxu1 }
 0x138   :  { %v2330_v26 = vpack.c.bf16 %v1347_v16, %v1347_v16  ;;  %v1087_v28 = vmul.f32 %v2865_v1, %v785_v24  ;;  %1926 = vst.msk [vmem:[#allocation10 + $0x1c] sm:$0xf] %vm1918_vm1, %v2268_v19  ;;  %v1160_v31 = vadd.f32 %v2867_v3, %v1025_v21  ;;  %v1224_v32 = vadd.f32 %v2867_v3, %v1089_v22  ;;  %v532_v35 = vpop.f32.mrb[11].mxu0  ;;  %v788_v36 = vpop.f32.mrb[11].mxu1 }
 0x139   :  { %1990 = vst.msk [vmem:[#allocation10 + $0x11c] sm:$0xf] %vm1918_vm1, %v2332_v20  ;;  %v1026_v33 = vmul.f32 %v2467_v29, %v2865_v1  ;;  %v1090_v34 = vmul.f32 %v2531_v30, %v2865_v1  ;;  %1924 = vst.msk [vmem:[#allocation10 + $0x14] sm:$0xf] %vm1918_vm1, %v2266_v25  ;;  %v1158_v37 = vadd.f32 %v2867_v3, %v1023_v27 }
 0x13a   :  { %1988 = vst.msk [vmem:[#allocation10 + $0x114] sm:$0xf] %vm1918_vm1, %v2330_v26  ;;  %v1222_v38 = vadd.f32 %v2867_v3, %v1087_v28  ;;  %v1024_v39 = vmul.f32 %v2865_v1, %v532_v35  ;;  %v1088_v40 = vmul.f32 %v2865_v1, %v788_v36  ;;  %v1288_v41 = vmax.f32 %v1160_v31, 0.0 }
 0x13b   :  { %v1352_v42 = vmax.f32 %v1224_v32, 0.0  ;;  %v1161_v43 = vadd.f32 %v2867_v3, %v1026_v33  ;;  %v1225_v44 = vadd.f32 %v2867_v3, %v1090_v34  ;;  %v1286_v45 = vmax.f32 %v1158_v37, 0.0 }
 0x13c   :  { %v1350_v46 = vmax.f32 %v1222_v38, 0.0  ;;  %v1159_v47 = vadd.f32 %v2867_v3, %v1024_v39  ;;  %v1223_v48 = vadd.f32 %v2867_v3, %v1088_v40  ;;  %v2271_v49 = vpack.c.bf16 %v1288_v41, %v1288_v41  ;;  %v2470_v57 = vpop.f32.mrb[12].mxu0 }
 0x13d   :  { %v2335_v50 = vpack.c.bf16 %v1352_v42, %v1352_v42  ;;  %v1289_v51 = vmax.f32 %v1161_v43, 0.0  ;;  %v1353_v52 = vmax.f32 %v1225_v44, 0.0  ;;  %v2269_v53 = vpack.c.bf16 %v1286_v45, %v1286_v45  ;;  %v2534_v58 = vpop.f32.mrb[12].mxu1  ;;  %v545_v63 = vpop.f32.mrb[13].mxu0 }
 0x13e   :  { %v2333_v54 = vpack.c.bf16 %v1350_v46, %v1350_v46  ;;  %v1287_v55 = vmax.f32 %v1159_v47, 0.0  ;;  %v1351_v56 = vmax.f32 %v1223_v48, 0.0  ;;  %1929 = vst.msk [vmem:[#allocation10 + $0x28] sm:$0xf] %vm1918_vm1, %v2271_v49  ;;  %v1029_v61 = vmul.f32 %v2470_v57, %v2865_v1  ;;  %v801_v0 = vpop.f32.mrb[13].mxu1  ;;  %v2471_v7 = vpop.f32.mrb[14].mxu0 }
 0x13f   :  { %1993 = vst.msk [vmem:[#allocation10 + $0x128] sm:$0xf] %vm1918_vm1, %v2335_v50  ;;  %v2272_v59 = vpack.c.bf16 %v1289_v51, %v1289_v51  ;;  %v2336_v60 = vpack.c.bf16 %v1353_v52, %v1353_v52  ;;  %v1093_v62 = vmul.f32 %v2534_v58, %v2865_v1  ;;  %1927 = vst.msk [vmem:[#allocation10 + $0x20] sm:$0xf] %vm1918_vm1, %v2269_v53  ;;  %v2535_v8 = vpop.f32.mrb[14].mxu1  ;;  %v548_v13 = vpop.f32.mrb[15].mxu0 }
 0x140   :  { %1991 = vst.msk [vmem:[#allocation10 + $0x120] sm:$0xf] %vm1918_vm1, %v2333_v54  ;;  %v2270_v2 = vpack.c.bf16 %v1287_v55, %v1287_v55  ;;  %v2334_v4 = vpack.c.bf16 %v1351_v56, %v1351_v56  ;;  %v1027_v5 = vmul.f32 %v2865_v1, %v545_v63  ;;  %v1091_v6 = vmul.f32 %v2865_v1, %v801_v0  ;;  %v804_v14 = vpop.f32.mrb[15].mxu1 }
 0x141   :  { %1930 = vst.msk [vmem:[#allocation10 + $0x2c] sm:$0xf] %vm1918_vm1, %v2272_v59  ;;  %1994 = vst.msk [vmem:[#allocation10 + $0x12c] sm:$0xf] %vm1918_vm1, %v2336_v60  ;;  %v1164_v9 = vadd.f32 %v2867_v3, %v1029_v61  ;;  %v1228_v10 = vadd.f32 %v2867_v3, %v1093_v62  ;;  %v1030_v11 = vmul.f32 %v2471_v7, %v2865_v1 }
 0x142   :  { %v1094_v12 = vmul.f32 %v2535_v8, %v2865_v1  ;;  %1928 = vst.msk [vmem:[#allocation10 + $0x24] sm:$0xf] %vm1918_vm1, %v2270_v2  ;;  %1992 = vst.msk [vmem:[#allocation10 + $0x124] sm:$0xf] %vm1918_vm1, %v2334_v4  ;;  %v1162_v15 = vadd.f32 %v2867_v3, %v1027_v5  ;;  %v1226_v16 = vadd.f32 %v2867_v3, %v1091_v6 }
 0x143   :  { %v1028_v17 = vmul.f32 %v2865_v1, %v548_v13  ;;  %v1092_v18 = vmul.f32 %v2865_v1, %v804_v14  ;;  %v1292_v19 = vmax.f32 %v1164_v9, 0.0  ;;  %v1356_v20 = vmax.f32 %v1228_v10, 0.0 }
 0x144   :  { %v1165_v21 = vadd.f32 %v2867_v3, %v1030_v11  ;;  %v1229_v22 = vadd.f32 %v2867_v3, %v1094_v12  ;;  %v1290_v23 = vmax.f32 %v1162_v15, 0.0  ;;  %v1354_v24 = vmax.f32 %v1226_v16, 0.0  ;;  %v2474_v35 = vpop.f32.mrb[16].mxu0 }
 0x145   :  { %v1163_v25 = vadd.f32 %v2867_v3, %v1028_v17  ;;  %v1227_v26 = vadd.f32 %v2867_v3, %v1092_v18  ;;  %v2275_v27 = vpack.c.bf16 %v1292_v19, %v1292_v19  ;;  %v2339_v28 = vpack.c.bf16 %v1356_v20, %v1356_v20  ;;  %v2538_v36 = vpop.f32.mrb[16].mxu1  ;;  %v561_v41 = vpop.f32.mrb[17].mxu0 }
 0x146   :  { %v1293_v29 = vmax.f32 %v1165_v21, 0.0  ;;  %v1357_v30 = vmax.f32 %v1229_v22, 0.0  ;;  %v2273_v31 = vpack.c.bf16 %v1290_v23, %v1290_v23  ;;  %v2337_v32 = vpack.c.bf16 %v1354_v24, %v1354_v24  ;;  %v817_v42 = vpop.f32.mrb[17].mxu1  ;;  %v2475_v47 = vpop.f32.mrb[18].mxu0 }
 0x147   :  { %v1291_v33 = vmax.f32 %v1163_v25, 0.0  ;;  %v1355_v34 = vmax.f32 %v1227_v26, 0.0  ;;  %1933 = vst.msk [vmem:[#allocation10 + $0x38] sm:$0xf] %vm1918_vm1, %v2275_v27  ;;  %1997 = vst.msk [vmem:[#allocation10 + $0x138] sm:$0xf] %vm1918_vm1, %v2339_v28  ;;  %v1033_v39 = vmul.f32 %v2474_v35, %v2865_v1  ;;  %v1097_v40 = vmul.f32 %v2538_v36, %v2865_v1 }
 0x148   :  { %v2276_v37 = vpack.c.bf16 %v1293_v29, %v1293_v29  ;;  %v2340_v38 = vpack.c.bf16 %v1357_v30, %v1357_v30  ;;  %1931 = vst.msk [vmem:[#allocation10 + $0x30] sm:$0xf] %vm1918_vm1, %v2273_v31  ;;  %1995 = vst.msk [vmem:[#allocation10 + $0x130] sm:$0xf] %vm1918_vm1, %v2337_v32  ;;  %v1031_v45 = vmul.f32 %v2865_v1, %v561_v41  ;;  %v2539_v48 = vpop.f32.mrb[18].mxu1  ;;  %v564_v53 = vpop.f32.mrb[19].mxu0 }
 0x149   :  { %v2274_v43 = vpack.c.bf16 %v1291_v33, %v1291_v33  ;;  %v2338_v44 = vpack.c.bf16 %v1355_v34, %v1355_v34  ;;  %v1095_v46 = vmul.f32 %v2865_v1, %v817_v42  ;;  %v1168_v49 = vadd.f32 %v2867_v3, %v1033_v39  ;;  %v820_v54 = vpop.f32.mrb[19].mxu1 }
 0x14a   :  { %1934 = vst.msk [vmem:[#allocation10 + $0x3c] sm:$0xf] %vm1918_vm1, %v2276_v37  ;;  %1998 = vst.msk [vmem:[#allocation10 + $0x13c] sm:$0xf] %vm1918_vm1, %v2340_v38  ;;  %v1232_v50 = vadd.f32 %v2867_v3, %v1097_v40  ;;  %v1034_v51 = vmul.f32 %v2475_v47, %v2865_v1  ;;  %v1098_v52 = vmul.f32 %v2539_v48, %v2865_v1 }
 0x14b   :  { %1932 = vst.msk [vmem:[#allocation10 + $0x34] sm:$0xf] %vm1918_vm1, %v2274_v43  ;;  %1996 = vst.msk [vmem:[#allocation10 + $0x134] sm:$0xf] %vm1918_vm1, %v2338_v44  ;;  %v1166_v55 = vadd.f32 %v2867_v3, %v1031_v45  ;;  %v1230_v56 = vadd.f32 %v2867_v3, %v1095_v46  ;;  %v1032_v57 = vmul.f32 %v2865_v1, %v564_v53  ;;  %v1296_v59 = vmax.f32 %v1168_v49, 0.0 }
 0x14c   :  { %v1096_v58 = vmul.f32 %v2865_v1, %v820_v54  ;;  %v1360_v60 = vmax.f32 %v1232_v50, 0.0  ;;  %v1169_v61 = vadd.f32 %v2867_v3, %v1034_v51  ;;  %v1233_v62 = vadd.f32 %v2867_v3, %v1098_v52  ;;  %v2478_v13 = vpop.f32.mrb[20].mxu0 }
 0x14d   :  { %v1294_v63 = vmax.f32 %v1166_v55, 0.0  ;;  %v1358_v0 = vmax.f32 %v1230_v56, 0.0  ;;  %v1167_v2 = vadd.f32 %v2867_v3, %v1032_v57  ;;  %v2279_v5 = vpack.c.bf16 %v1296_v59, %v1296_v59  ;;  %v2542_v14 = vpop.f32.mrb[20].mxu1  ;;  %v577_v19 = vpop.f32.mrb[21].mxu0 }
 0x14e   :  { %v1231_v4 = vadd.f32 %v2867_v3, %v1096_v58  ;;  %v2343_v6 = vpack.c.bf16 %v1360_v60, %v1360_v60  ;;  %v1297_v7 = vmax.f32 %v1169_v61, 0.0  ;;  %v1361_v8 = vmax.f32 %v1233_v62, 0.0  ;;  %v833_v20 = vpop.f32.mrb[21].mxu1  ;;  %v2479_v25 = vpop.f32.mrb[22].mxu0 }
 0x14f   :  { %v2277_v9 = vpack.c.bf16 %v1294_v63, %v1294_v63  ;;  %v2341_v10 = vpack.c.bf16 %v1358_v0, %v1358_v0  ;;  %v1295_v11 = vmax.f32 %v1167_v2, 0.0  ;;  %1937 = vst.msk [vmem:[#allocation10 + $0x48] sm:$0xf] %vm1918_vm1, %v2279_v5  ;;  %v1037_v17 = vmul.f32 %v2478_v13, %v2865_v1  ;;  %v2543_v26 = vpop.f32.mrb[22].mxu1  ;;  %v580_v31 = vpop.f32.mrb[23].mxu0 }
 0x150   :  { %v1359_v12 = vmax.f32 %v1231_v4, 0.0  ;;  %2001 = vst.msk [vmem:[#allocation10 + $0x148] sm:$0xf] %vm1918_vm1, %v2343_v6  ;;  %v2280_v15 = vpack.c.bf16 %v1297_v7, %v1297_v7  ;;  %v2344_v16 = vpack.c.bf16 %v1361_v8, %v1361_v8  ;;  %v1101_v18 = vmul.f32 %v2542_v14, %v2865_v1  ;;  %v836_v32 = vpop.f32.mrb[23].mxu1 }
 0x151   :  { %1935 = vst.msk [vmem:[#allocation10 + $0x40] sm:$0xf] %vm1918_vm1, %v2277_v9  ;;  %1999 = vst.msk [vmem:[#allocation10 + $0x140] sm:$0xf] %vm1918_vm1, %v2341_v10  ;;  %v2278_v21 = vpack.c.bf16 %v1295_v11, %v1295_v11  ;;  %v1035_v23 = vmul.f32 %v2865_v1, %v577_v19  ;;  %v1099_v24 = vmul.f32 %v2865_v1, %v833_v20 }
 0x152   :  { %v2342_v22 = vpack.c.bf16 %v1359_v12, %v1359_v12  ;;  %1938 = vst.msk [vmem:[#allocation10 + $0x4c] sm:$0xf] %vm1918_vm1, %v2280_v15  ;;  %2002 = vst.msk [vmem:[#allocation10 + $0x14c] sm:$0xf] %vm1918_vm1, %v2344_v16  ;;  %v1172_v27 = vadd.f32 %v2867_v3, %v1037_v17  ;;  %v1236_v28 = vadd.f32 %v2867_v3, %v1101_v18 }
 0x153   :  { %v1038_v29 = vmul.f32 %v2479_v25, %v2865_v1  ;;  %v1102_v30 = vmul.f32 %v2543_v26, %v2865_v1  ;;  %1936 = vst.msk [vmem:[#allocation10 + $0x44] sm:$0xf] %vm1918_vm1, %v2278_v21  ;;  %v1170_v33 = vadd.f32 %v2867_v3, %v1035_v23  ;;  %v1234_v34 = vadd.f32 %v2867_v3, %v1099_v24 }
 0x154   :  { %2000 = vst.msk [vmem:[#allocation10 + $0x144] sm:$0xf] %vm1918_vm1, %v2342_v22  ;;  %v1036_v35 = vmul.f32 %v2865_v1, %v580_v31  ;;  %v1100_v36 = vmul.f32 %v2865_v1, %v836_v32  ;;  %v1300_v37 = vmax.f32 %v1172_v27, 0.0  ;;  %v1364_v38 = vmax.f32 %v1236_v28, 0.0  ;;  %v2482_v53 = vpop.f32.mrb[24].mxu0 }
 0x155   :  { %v1173_v39 = vadd.f32 %v2867_v3, %v1038_v29  ;;  %v1237_v40 = vadd.f32 %v2867_v3, %v1102_v30  ;;  %v1298_v41 = vmax.f32 %v1170_v33, 0.0  ;;  %v1362_v42 = vmax.f32 %v1234_v34, 0.0  ;;  %v2546_v54 = vpop.f32.mrb[24].mxu1  ;;  %v593_v59 = vpop.f32.mrb[25].mxu0 }
 0x156   :  { %v1171_v43 = vadd.f32 %v2867_v3, %v1036_v35  ;;  %v1235_v44 = vadd.f32 %v2867_v3, %v1100_v36  ;;  %v2283_v45 = vpack.c.bf16 %v1300_v37, %v1300_v37  ;;  %v2347_v46 = vpack.c.bf16 %v1364_v38, %v1364_v38  ;;  %v849_v60 = vpop.f32.mrb[25].mxu1  ;;  %v2483_v2 = vpop.f32.mrb[26].mxu0 }
 0x157   :  { %v1301_v47 = vmax.f32 %v1173_v39, 0.0  ;;  %v1365_v48 = vmax.f32 %v1237_v40, 0.0  ;;  %v2281_v49 = vpack.c.bf16 %v1298_v41, %v1298_v41  ;;  %v2345_v50 = vpack.c.bf16 %v1362_v42, %v1362_v42  ;;  %v2547_v4 = vpop.f32.mrb[26].mxu1  ;;  %v596_v9 = vpop.f32.mrb[27].mxu0 }
 0x158   :  { %v1299_v51 = vmax.f32 %v1171_v43, 0.0  ;;  %v1363_v52 = vmax.f32 %v1235_v44, 0.0  ;;  %1941 = vst.msk [vmem:[#allocation10 + $0x58] sm:$0xf] %vm1918_vm1, %v2283_v45  ;;  %2005 = vst.msk [vmem:[#allocation10 + $0x158] sm:$0xf] %vm1918_vm1, %v2347_v46  ;;  %v1041_v57 = vmul.f32 %v2482_v53, %v2865_v1  ;;  %v1105_v58 = vmul.f32 %v2546_v54, %v2865_v1 }
 0x159   :  { %v2284_v55 = vpack.c.bf16 %v1301_v47, %v1301_v47  ;;  %v2348_v56 = vpack.c.bf16 %v1365_v48, %v1365_v48  ;;  %1939 = vst.msk [vmem:[#allocation10 + $0x50] sm:$0xf] %vm1918_vm1, %v2281_v49  ;;  %2003 = vst.msk [vmem:[#allocation10 + $0x150] sm:$0xf] %vm1918_vm1, %v2345_v50  ;;  %v1039_v63 = vmul.f32 %v2865_v1, %v593_v59  ;;  %v852_v10 = vpop.f32.mrb[27].mxu1 }
 0x15a   :  { %v2282_v61 = vpack.c.bf16 %v1299_v51, %v1299_v51  ;;  %v2346_v62 = vpack.c.bf16 %v1363_v52, %v1363_v52  ;;  %v1103_v0 = vmul.f32 %v2865_v1, %v849_v60  ;;  %v1176_v5 = vadd.f32 %v2867_v3, %v1041_v57 }
 0x15b   :  { %1942 = vst.msk [vmem:[#allocation10 + $0x5c] sm:$0xf] %vm1918_vm1, %v2284_v55  ;;  %2006 = vst.msk [vmem:[#allocation10 + $0x15c] sm:$0xf] %vm1918_vm1, %v2348_v56  ;;  %v1240_v6 = vadd.f32 %v2867_v3, %v1105_v58  ;;  %v1042_v7 = vmul.f32 %v2483_v2, %v2865_v1  ;;  %v1106_v8 = vmul.f32 %v2547_v4, %v2865_v1 }
 0x15c   :  { %1940 = vst.msk [vmem:[#allocation10 + $0x54] sm:$0xf] %vm1918_vm1, %v2282_v61  ;;  %2004 = vst.msk [vmem:[#allocation10 + $0x154] sm:$0xf] %vm1918_vm1, %v2346_v62  ;;  %v1174_v11 = vadd.f32 %v2867_v3, %v1039_v63  ;;  %v1238_v12 = vadd.f32 %v2867_v3, %v1103_v0  ;;  %v1040_v13 = vmul.f32 %v2865_v1, %v596_v9  ;;  %v1304_v15 = vmax.f32 %v1176_v5, 0.0  ;;  %v2486_v31 = vpop.f32.mrb[28].mxu0 }
 0x15d   :  { %v1104_v14 = vmul.f32 %v2865_v1, %v852_v10  ;;  %v1368_v16 = vmax.f32 %v1240_v6, 0.0  ;;  %v1177_v17 = vadd.f32 %v2867_v3, %v1042_v7  ;;  %v1241_v18 = vadd.f32 %v2867_v3, %v1106_v8  ;;  %v2550_v32 = vpop.f32.mrb[28].mxu1  ;;  %v609_v37 = vpop.f32.mrb[29].mxu0 }
 0x15e   :  { %v1302_v19 = vmax.f32 %v1174_v11, 0.0  ;;  %v1366_v20 = vmax.f32 %v1238_v12, 0.0  ;;  %v1175_v21 = vadd.f32 %v2867_v3, %v1040_v13  ;;  %v2287_v23 = vpack.c.bf16 %v1304_v15, %v1304_v15  ;;  %v865_v38 = vpop.f32.mrb[29].mxu1  ;;  %v2487_v43 = vpop.f32.mrb[30].mxu0 }
 0x15f   :  { %v1239_v22 = vadd.f32 %v2867_v3, %v1104_v14  ;;  %v2351_v24 = vpack.c.bf16 %v1368_v16, %v1368_v16  ;;  %v1305_v25 = vmax.f32 %v1177_v17, 0.0  ;;  %v1369_v26 = vmax.f32 %v1241_v18, 0.0  ;;  %v2551_v44 = vpop.f32.mrb[30].mxu1  ;;  %v612_v49 = vpop.f32.mrb[31].mxu0 }
 0x160   :  { %v2285_v27 = vpack.c.bf16 %v1302_v19, %v1302_v19  ;;  %v2349_v28 = vpack.c.bf16 %v1366_v20, %v1366_v20  ;;  %v1303_v29 = vmax.f32 %v1175_v21, 0.0  ;;  %1945 = vst.msk [vmem:[#allocation10 + $0x68] sm:$0xf] %vm1918_vm1, %v2287_v23  ;;  %v1045_v35 = vmul.f32 %v2486_v31, %v2865_v1  ;;  %v868_v50 = vpop.f32.mrb[31].mxu1 }
 0x161   :  { %v1367_v30 = vmax.f32 %v1239_v22, 0.0  ;;  %2009 = vst.msk [vmem:[#allocation10 + $0x168] sm:$0xf] %vm1918_vm1, %v2351_v24  ;;  %v2288_v33 = vpack.c.bf16 %v1305_v25, %v1305_v25  ;;  %v2352_v34 = vpack.c.bf16 %v1369_v26, %v1369_v26  ;;  %v1109_v36 = vmul.f32 %v2550_v32, %v2865_v1 }
 0x162   :  { %1943 = vst.msk [vmem:[#allocation10 + $0x60] sm:$0xf] %vm1918_vm1, %v2285_v27  ;;  %2007 = vst.msk [vmem:[#allocation10 + $0x160] sm:$0xf] %vm1918_vm1, %v2349_v28  ;;  %v2286_v39 = vpack.c.bf16 %v1303_v29, %v1303_v29  ;;  %v1043_v41 = vmul.f32 %v2865_v1, %v609_v37  ;;  %v1107_v42 = vmul.f32 %v2865_v1, %v865_v38 }
 0x163   :  { %v2350_v40 = vpack.c.bf16 %v1367_v30, %v1367_v30  ;;  %1946 = vst.msk [vmem:[#allocation10 + $0x6c] sm:$0xf] %vm1918_vm1, %v2288_v33  ;;  %2010 = vst.msk [vmem:[#allocation10 + $0x16c] sm:$0xf] %vm1918_vm1, %v2352_v34  ;;  %v1180_v45 = vadd.f32 %v2867_v3, %v1045_v35  ;;  %v1244_v46 = vadd.f32 %v2867_v3, %v1109_v36 }
 0x164   :  { %v1046_v47 = vmul.f32 %v2487_v43, %v2865_v1  ;;  %v1110_v48 = vmul.f32 %v2551_v44, %v2865_v1  ;;  %1944 = vst.msk [vmem:[#allocation10 + $0x64] sm:$0xf] %vm1918_vm1, %v2286_v39  ;;  %v1178_v51 = vadd.f32 %v2867_v3, %v1043_v41  ;;  %v1242_v52 = vadd.f32 %v2867_v3, %v1107_v42  ;;  %v2490_v9 = vpop.f32.mrb[32].mxu0 }
 0x165   :  { %2008 = vst.msk [vmem:[#allocation10 + $0x164] sm:$0xf] %vm1918_vm1, %v2350_v40  ;;  %v1044_v53 = vmul.f32 %v2865_v1, %v612_v49  ;;  %v1108_v54 = vmul.f32 %v2865_v1, %v868_v50  ;;  %v1308_v55 = vmax.f32 %v1180_v45, 0.0  ;;  %v1372_v56 = vmax.f32 %v1244_v46, 0.0  ;;  %v2554_v10 = vpop.f32.mrb[32].mxu1  ;;  %v625_v15 = vpop.f32.mrb[33].mxu0 }
 0x166   :  { %v1181_v57 = vadd.f32 %v2867_v3, %v1046_v47  ;;  %v1245_v58 = vadd.f32 %v2867_v3, %v1110_v48  ;;  %v1306_v59 = vmax.f32 %v1178_v51, 0.0  ;;  %v1370_v60 = vmax.f32 %v1242_v52, 0.0  ;;  %v881_v16 = vpop.f32.mrb[33].mxu1  ;;  %v2491_v21 = vpop.f32.mrb[34].mxu0 }
 0x167   :  { %v1179_v61 = vadd.f32 %v2867_v3, %v1044_v53  ;;  %v1243_v62 = vadd.f32 %v2867_v3, %v1108_v54  ;;  %v2291_v63 = vpack.c.bf16 %v1308_v55, %v1308_v55  ;;  %v2355_v0 = vpack.c.bf16 %v1372_v56, %v1372_v56  ;;  %v2555_v22 = vpop.f32.mrb[34].mxu1  ;;  %v628_v27 = vpop.f32.mrb[35].mxu0 }
 0x168   :  { %v1309_v2 = vmax.f32 %v1181_v57, 0.0  ;;  %v1373_v4 = vmax.f32 %v1245_v58, 0.0  ;;  %v2289_v5 = vpack.c.bf16 %v1306_v59, %v1306_v59  ;;  %v2353_v6 = vpack.c.bf16 %v1370_v60, %v1370_v60  ;;  %v884_v28 = vpop.f32.mrb[35].mxu1 }
 0x169   :  { %v1307_v7 = vmax.f32 %v1179_v61, 0.0  ;;  %v1371_v8 = vmax.f32 %v1243_v62, 0.0  ;;  %1949 = vst.msk [vmem:[#allocation10 + $0x78] sm:$0xf] %vm1918_vm1, %v2291_v63  ;;  %2013 = vst.msk [vmem:[#allocation10 + $0x178] sm:$0xf] %vm1918_vm1, %v2355_v0  ;;  %v1049_v13 = vmul.f32 %v2490_v9, %v2865_v1  ;;  %v1113_v14 = vmul.f32 %v2554_v10, %v2865_v1 }
 0x16a   :  { %v2292_v11 = vpack.c.bf16 %v1309_v2, %v1309_v2  ;;  %v2356_v12 = vpack.c.bf16 %v1373_v4, %v1373_v4  ;;  %1947 = vst.msk [vmem:[#allocation10 + $0x70] sm:$0xf] %vm1918_vm1, %v2289_v5  ;;  %2011 = vst.msk [vmem:[#allocation10 + $0x170] sm:$0xf] %vm1918_vm1, %v2353_v6  ;;  %v1047_v19 = vmul.f32 %v2865_v1, %v625_v15 }
 0x16b   :  { %v2290_v17 = vpack.c.bf16 %v1307_v7, %v1307_v7  ;;  %v2354_v18 = vpack.c.bf16 %v1371_v8, %v1371_v8  ;;  %v1111_v20 = vmul.f32 %v2865_v1, %v881_v16  ;;  %v1184_v23 = vadd.f32 %v2867_v3, %v1049_v13 }
 0x16c   :  { %1950 = vst.msk [vmem:[#allocation10 + $0x7c] sm:$0xf] %vm1918_vm1, %v2292_v11  ;;  %2014 = vst.msk [vmem:[#allocation10 + $0x17c] sm:$0xf] %vm1918_vm1, %v2356_v12  ;;  %v1248_v24 = vadd.f32 %v2867_v3, %v1113_v14  ;;  %v1050_v25 = vmul.f32 %v2491_v21, %v2865_v1  ;;  %v1114_v26 = vmul.f32 %v2555_v22, %v2865_v1  ;;  %v2494_v49 = vpop.f32.mrb[36].mxu0 }
 0x16d   :  { %1948 = vst.msk [vmem:[#allocation10 + $0x74] sm:$0xf] %vm1918_vm1, %v2290_v17  ;;  %2012 = vst.msk [vmem:[#allocation10 + $0x174] sm:$0xf] %vm1918_vm1, %v2354_v18  ;;  %v1182_v29 = vadd.f32 %v2867_v3, %v1047_v19  ;;  %v1246_v30 = vadd.f32 %v2867_v3, %v1111_v20  ;;  %v1048_v31 = vmul.f32 %v2865_v1, %v628_v27  ;;  %v1312_v33 = vmax.f32 %v1184_v23, 0.0  ;;  %v2558_v50 = vpop.f32.mrb[36].mxu1 }
 0x16e   :  { %v1112_v32 = vmul.f32 %v2865_v1, %v884_v28  ;;  %v1376_v34 = vmax.f32 %v1248_v24, 0.0  ;;  %v1185_v35 = vadd.f32 %v2867_v3, %v1050_v25  ;;  %v1249_v36 = vadd.f32 %v2867_v3, %v1114_v26  ;;  %v641_v55 = vpop.f32.mrb[37].mxu0  ;;  %v897_v56 = vpop.f32.mrb[37].mxu1 }
 0x16f   :  { %v1310_v37 = vmax.f32 %v1182_v29, 0.0  ;;  %v1374_v38 = vmax.f32 %v1246_v30, 0.0  ;;  %v1183_v39 = vadd.f32 %v2867_v3, %v1048_v31  ;;  %v2295_v41 = vpack.c.bf16 %v1312_v33, %v1312_v33  ;;  %v2495_v61 = vpop.f32.mrb[38].mxu0  ;;  %v2559_v62 = vpop.f32.mrb[38].mxu1 }
 0x170   :  { %v1247_v40 = vadd.f32 %v2867_v3, %v1112_v32  ;;  %v2359_v42 = vpack.c.bf16 %v1376_v34, %v1376_v34  ;;  %v1313_v43 = vmax.f32 %v1185_v35, 0.0  ;;  %v1377_v44 = vmax.f32 %v1249_v36, 0.0  ;;  %v644_v5 = vpop.f32.mrb[39].mxu0  ;;  %v900_v6 = vpop.f32.mrb[39].mxu1 }
 0x171   :  { %v2293_v45 = vpack.c.bf16 %v1310_v37, %v1310_v37  ;;  %v2357_v46 = vpack.c.bf16 %v1374_v38, %v1374_v38  ;;  %v1311_v47 = vmax.f32 %v1183_v39, 0.0  ;;  %1953 = vst.msk [vmem:[#allocation10 + $0x88] sm:$0xf] %vm1918_vm1, %v2295_v41  ;;  %v1053_v53 = vmul.f32 %v2494_v49, %v2865_v1 }
 0x172   :  { %v1375_v48 = vmax.f32 %v1247_v40, 0.0  ;;  %2017 = vst.msk [vmem:[#allocation10 + $0x188] sm:$0xf] %vm1918_vm1, %v2359_v42  ;;  %v2296_v51 = vpack.c.bf16 %v1313_v43, %v1313_v43  ;;  %v2360_v52 = vpack.c.bf16 %v1377_v44, %v1377_v44  ;;  %v1117_v54 = vmul.f32 %v2558_v50, %v2865_v1 }
 0x173   :  { %1951 = vst.msk [vmem:[#allocation10 + $0x80] sm:$0xf] %vm1918_vm1, %v2293_v45  ;;  %2015 = vst.msk [vmem:[#allocation10 + $0x180] sm:$0xf] %vm1918_vm1, %v2357_v46  ;;  %v2294_v57 = vpack.c.bf16 %v1311_v47, %v1311_v47  ;;  %v1051_v59 = vmul.f32 %v2865_v1, %v641_v55  ;;  %v1115_v60 = vmul.f32 %v2865_v1, %v897_v56 }
 0x174   :  { %v2358_v58 = vpack.c.bf16 %v1375_v48, %v1375_v48  ;;  %1954 = vst.msk [vmem:[#allocation10 + $0x8c] sm:$0xf] %vm1918_vm1, %v2296_v51  ;;  %2018 = vst.msk [vmem:[#allocation10 + $0x18c] sm:$0xf] %vm1918_vm1, %v2360_v52  ;;  %v1188_v63 = vadd.f32 %v2867_v3, %v1053_v53  ;;  %v1252_v0 = vadd.f32 %v2867_v3, %v1117_v54  ;;  %v2498_v27 = vpop.f32.mrb[40].mxu0 }
 0x175   :  { %v1054_v2 = vmul.f32 %v2495_v61, %v2865_v1  ;;  %v1118_v4 = vmul.f32 %v2559_v62, %v2865_v1  ;;  %1952 = vst.msk [vmem:[#allocation10 + $0x84] sm:$0xf] %vm1918_vm1, %v2294_v57  ;;  %v1186_v7 = vadd.f32 %v2867_v3, %v1051_v59  ;;  %v1250_v8 = vadd.f32 %v2867_v3, %v1115_v60  ;;  %v2562_v28 = vpop.f32.mrb[40].mxu1  ;;  %v657_v33 = vpop.f32.mrb[41].mxu0 }
 0x176   :  { %2016 = vst.msk [vmem:[#allocation10 + $0x184] sm:$0xf] %vm1918_vm1, %v2358_v58  ;;  %v1052_v9 = vmul.f32 %v2865_v1, %v644_v5  ;;  %v1116_v10 = vmul.f32 %v2865_v1, %v900_v6  ;;  %v1316_v11 = vmax.f32 %v1188_v63, 0.0  ;;  %v1380_v12 = vmax.f32 %v1252_v0, 0.0  ;;  %v913_v34 = vpop.f32.mrb[41].mxu1  ;;  %v2499_v39 = vpop.f32.mrb[42].mxu0 }
 0x177   :  { %v1189_v13 = vadd.f32 %v2867_v3, %v1054_v2  ;;  %v1253_v14 = vadd.f32 %v2867_v3, %v1118_v4  ;;  %v1314_v15 = vmax.f32 %v1186_v7, 0.0  ;;  %v1378_v16 = vmax.f32 %v1250_v8, 0.0  ;;  %v2563_v40 = vpop.f32.mrb[42].mxu1  ;;  %v660_v45 = vpop.f32.mrb[43].mxu0  ;;  %v3127_v8 = vld [vmem:[#allocation7] ss:$0 sm:$0xff] }
 0x178   :  { %v1187_v17 = vadd.f32 %v2867_v3, %v1052_v9  ;;  %v1251_v18 = vadd.f32 %v2867_v3, %v1116_v10  ;;  %v2299_v19 = vpack.c.bf16 %v1316_v11, %v1316_v11  ;;  %v2363_v20 = vpack.c.bf16 %v1380_v12, %v1380_v12  ;;  %v916_v46 = vpop.f32.mrb[43].mxu1 }
 0x179   :  { %v1317_v21 = vmax.f32 %v1189_v13, 0.0  ;;  %v1381_v22 = vmax.f32 %v1253_v14, 0.0  ;;  %v2297_v23 = vpack.c.bf16 %v1314_v15, %v1314_v15  ;;  %v2361_v24 = vpack.c.bf16 %v1378_v16, %v1378_v16 }
 0x17a   :  { %v1315_v25 = vmax.f32 %v1187_v17, 0.0  ;;  %v1379_v26 = vmax.f32 %v1251_v18, 0.0  ;;  %1957 = vst.msk [vmem:[#allocation10 + $0x98] sm:$0xf] %vm1918_vm1, %v2299_v19  ;;  %2021 = vst.msk [vmem:[#allocation10 + $0x198] sm:$0xf] %vm1918_vm1, %v2363_v20  ;;  %v1057_v31 = vmul.f32 %v2498_v27, %v2865_v1  ;;  %v1121_v32 = vmul.f32 %v2562_v28, %v2865_v1 }
 0x17b   :  { %v2300_v29 = vpack.c.bf16 %v1317_v21, %v1317_v21  ;;  %v2364_v30 = vpack.c.bf16 %v1381_v22, %v1381_v22  ;;  %1955 = vst.msk [vmem:[#allocation10 + $0x90] sm:$0xf] %vm1918_vm1, %v2297_v23  ;;  %2019 = vst.msk [vmem:[#allocation10 + $0x190] sm:$0xf] %vm1918_vm1, %v2361_v24  ;;  %v1055_v37 = vmul.f32 %v2865_v1, %v657_v33  ;;  %v3137_v18 = vld [vmem:[#allocation8] ss:$0 sm:$0xff] }
 0x17c   :  { %v2298_v35 = vpack.c.bf16 %v1315_v25, %v1315_v25  ;;  %v2362_v36 = vpack.c.bf16 %v1379_v26, %v1379_v26  ;;  %v1119_v38 = vmul.f32 %v2865_v1, %v913_v34  ;;  %v1192_v41 = vadd.f32 %v2867_v3, %v1057_v31  ;;  %v2502_v4 = vpop.f32.mrb[44].mxu0 }
 0x17d   :  { %1958 = vst.msk [vmem:[#allocation10 + $0x9c] sm:$0xf] %vm1918_vm1, %v2300_v29  ;;  %2022 = vst.msk [vmem:[#allocation10 + $0x19c] sm:$0xf] %vm1918_vm1, %v2364_v30  ;;  %v1256_v42 = vadd.f32 %v2867_v3, %v1121_v32  ;;  %v1058_v43 = vmul.f32 %v2499_v39, %v2865_v1  ;;  %v1122_v44 = vmul.f32 %v2563_v40, %v2865_v1  ;;  %v2566_v5 = vpop.f32.mrb[44].mxu1  ;;  %v673_v10 = vpop.f32.mrb[45].mxu0 }
 0x17e   :  { %1956 = vst.msk [vmem:[#allocation10 + $0x94] sm:$0xf] %vm1918_vm1, %v2298_v35  ;;  %2020 = vst.msk [vmem:[#allocation10 + $0x194] sm:$0xf] %vm1918_vm1, %v2362_v36  ;;  %v1190_v47 = vadd.f32 %v2867_v3, %v1055_v37  ;;  %v1254_v48 = vadd.f32 %v2867_v3, %v1119_v38  ;;  %v1056_v49 = vmul.f32 %v2865_v1, %v660_v45  ;;  %v1320_v51 = vmax.f32 %v1192_v41, 0.0  ;;  %v929_v11 = vpop.f32.mrb[45].mxu1 }
 0x17f   :  { %v1120_v50 = vmul.f32 %v2865_v1, %v916_v46  ;;  %v1384_v52 = vmax.f32 %v1256_v42, 0.0  ;;  %v1193_v53 = vadd.f32 %v2867_v3, %v1058_v43  ;;  %v1257_v54 = vadd.f32 %v2867_v3, %v1122_v44  ;;  %v2503_v16 = vpop.f32.mrb[46].mxu0  ;;  %v2567_v17 = vpop.f32.mrb[46].mxu1 }
 0x180   :  { %v1318_v55 = vmax.f32 %v1190_v47, 0.0  ;;  %v1382_v56 = vmax.f32 %v1254_v48, 0.0  ;;  %v1191_v57 = vadd.f32 %v2867_v3, %v1056_v49  ;;  %v2303_v59 = vpack.c.bf16 %v1320_v51, %v1320_v51  ;;  %v676_v23 = vpop.f32.mrb[47].mxu0  ;;  %v932_v24 = vpop.f32.mrb[47].mxu1 }
 0x181   :  { %v1255_v58 = vadd.f32 %v2867_v3, %v1120_v50  ;;  %v2367_v60 = vpack.c.bf16 %v1384_v52, %v1384_v52  ;;  %v1321_v61 = vmax.f32 %v1193_v53, 0.0  ;;  %v1385_v62 = vmax.f32 %v1257_v54, 0.0 }
 0x182   :  { %v2301_v63 = vpack.c.bf16 %v1318_v55, %v1318_v55  ;;  %v2365_v0 = vpack.c.bf16 %v1382_v56, %v1382_v56  ;;  %v1319_v2 = vmax.f32 %v1191_v57, 0.0  ;;  %1961 = vst.msk [vmem:[#allocation10 + $0xa8] sm:$0xf] %vm1918_vm1, %v2303_v59  ;;  %v1061_v3 = vmul.f32 %v3127_v8, %v2502_v4 }
 0x183   :  { %v1383_v1 = vmax.f32 %v1255_v58, 0.0  ;;  %2025 = vst.msk [vmem:[#allocation10 + $0x1a8] sm:$0xf] %vm1918_vm1, %v2367_v60  ;;  %v2304_v6 = vpack.c.bf16 %v1321_v61, %v1321_v61  ;;  %v2368_v7 = vpack.c.bf16 %v1385_v62, %v1385_v62  ;;  %v1125_v9 = vmul.f32 %v3127_v8, %v2566_v5 }
 0x184   :  { %1959 = vst.msk [vmem:[#allocation10 + $0xa0] sm:$0xf] %vm1918_vm1, %v2301_v63  ;;  %2023 = vst.msk [vmem:[#allocation10 + $0x1a0] sm:$0xf] %vm1918_vm1, %v2365_v0  ;;  %v2302_v12 = vpack.c.bf16 %v1319_v2, %v1319_v2  ;;  %v1059_v14 = vmul.f32 %v3127_v8, %v673_v10  ;;  %v1123_v15 = vmul.f32 %v3127_v8, %v929_v11  ;;  %v2506_v45 = vpop.f32.mrb[48].mxu0 }
 0x185   :  { %v2366_v13 = vpack.c.bf16 %v1383_v1, %v1383_v1  ;;  %1962 = vst.msk [vmem:[#allocation10 + $0xac] sm:$0xf] %vm1918_vm1, %v2304_v6  ;;  %2026 = vst.msk [vmem:[#allocation10 + $0x1ac] sm:$0xf] %vm1918_vm1, %v2368_v7  ;;  %v1196_v19 = vadd.f32 %v3137_v18, %v1061_v3  ;;  %v1260_v20 = vadd.f32 %v3137_v18, %v1125_v9  ;;  %v2570_v46 = vpop.f32.mrb[48].mxu1  ;;  %v689_v51 = vpop.f32.mrb[49].mxu0 }
 0x186   :  { %v1062_v21 = vmul.f32 %v3127_v8, %v2503_v16  ;;  %v1126_v22 = vmul.f32 %v3127_v8, %v2567_v17  ;;  %1960 = vst.msk [vmem:[#allocation10 + $0xa4] sm:$0xf] %vm1918_vm1, %v2302_v12  ;;  %v1194_v25 = vadd.f32 %v3137_v18, %v1059_v14  ;;  %v1258_v26 = vadd.f32 %v3137_v18, %v1123_v15  ;;  %v945_v52 = vpop.f32.mrb[49].mxu1  ;;  %v2507_v57 = vpop.f32.mrb[50].mxu0 }
 0x187   :  { %2024 = vst.msk [vmem:[#allocation10 + $0x1a4] sm:$0xf] %vm1918_vm1, %v2366_v13  ;;  %v1060_v27 = vmul.f32 %v3127_v8, %v676_v23  ;;  %v1124_v28 = vmul.f32 %v3127_v8, %v932_v24  ;;  %v1324_v29 = vmax.f32 %v1196_v19, 0.0  ;;  %v1388_v30 = vmax.f32 %v1260_v20, 0.0  ;;  %v2571_v58 = vpop.f32.mrb[50].mxu1  ;;  %v692_v63 = vpop.f32.mrb[51].mxu0 }
 0x188   :  { %v1197_v31 = vadd.f32 %v3137_v18, %v1062_v21  ;;  %v1261_v32 = vadd.f32 %v3137_v18, %v1126_v22  ;;  %v1322_v33 = vmax.f32 %v1194_v25, 0.0  ;;  %v1386_v34 = vmax.f32 %v1258_v26, 0.0  ;;  %v948_v0 = vpop.f32.mrb[51].mxu1 }
 0x189   :  { %v1195_v35 = vadd.f32 %v3137_v18, %v1060_v27  ;;  %v1259_v36 = vadd.f32 %v3137_v18, %v1124_v28  ;;  %v2307_v37 = vpack.c.bf16 %v1324_v29, %v1324_v29  ;;  %v2371_v38 = vpack.c.bf16 %v1388_v30, %v1388_v30 }
 0x18a   :  { %v1325_v39 = vmax.f32 %v1197_v31, 0.0  ;;  %v1389_v40 = vmax.f32 %v1261_v32, 0.0  ;;  %v2305_v41 = vpack.c.bf16 %v1322_v33, %v1322_v33  ;;  %v2369_v42 = vpack.c.bf16 %v1386_v34, %v1386_v34 }
 0x18b   :  { %v1323_v43 = vmax.f32 %v1195_v35, 0.0  ;;  %v1387_v44 = vmax.f32 %v1259_v36, 0.0  ;;  %1965 = vst.msk [vmem:[#allocation10 + $0xb8] sm:$0xf] %vm1918_vm1, %v2307_v37  ;;  %2029 = vst.msk [vmem:[#allocation10 + $0x1b8] sm:$0xf] %vm1918_vm1, %v2371_v38  ;;  %v1065_v49 = vmul.f32 %v3127_v8, %v2506_v45  ;;  %v1129_v50 = vmul.f32 %v3127_v8, %v2570_v46 }
 0x18c   :  { %v2308_v47 = vpack.c.bf16 %v1325_v39, %v1325_v39  ;;  %v2372_v48 = vpack.c.bf16 %v1389_v40, %v1389_v40  ;;  %1963 = vst.msk [vmem:[#allocation10 + $0xb0] sm:$0xf] %vm1918_vm1, %v2305_v41  ;;  %2027 = vst.msk [vmem:[#allocation10 + $0x1b0] sm:$0xf] %vm1918_vm1, %v2369_v42  ;;  %v1063_v55 = vmul.f32 %v3127_v8, %v689_v51  ;;  %v2510_v23 = vpop.f32.mrb[52].mxu0 }
 0x18d   :  { %v2306_v53 = vpack.c.bf16 %v1323_v43, %v1323_v43  ;;  %v2370_v54 = vpack.c.bf16 %v1387_v44, %v1387_v44  ;;  %v1127_v56 = vmul.f32 %v3127_v8, %v945_v52  ;;  %v1200_v59 = vadd.f32 %v3137_v18, %v1065_v49  ;;  %v2574_v24 = vpop.f32.mrb[52].mxu1  ;;  %v705_v29 = vpop.f32.mrb[53].mxu0 }
 0x18e   :  { %1966 = vst.msk [vmem:[#allocation10 + $0xbc] sm:$0xf] %vm1918_vm1, %v2308_v47  ;;  %2030 = vst.msk [vmem:[#allocation10 + $0x1bc] sm:$0xf] %vm1918_vm1, %v2372_v48  ;;  %v1264_v60 = vadd.f32 %v3137_v18, %v1129_v50  ;;  %v1066_v61 = vmul.f32 %v3127_v8, %v2507_v57  ;;  %v1130_v62 = vmul.f32 %v3127_v8, %v2571_v58  ;;  %v961_v30 = vpop.f32.mrb[53].mxu1  ;;  %v2511_v35 = vpop.f32.mrb[54].mxu0 }
 0x18f   :  { %1964 = vst.msk [vmem:[#allocation10 + $0xb4] sm:$0xf] %vm1918_vm1, %v2306_v53  ;;  %2028 = vst.msk [vmem:[#allocation10 + $0x1b4] sm:$0xf] %vm1918_vm1, %v2370_v54  ;;  %v1198_v2 = vadd.f32 %v3137_v18, %v1063_v55  ;;  %v1262_v1 = vadd.f32 %v3137_v18, %v1127_v56  ;;  %v1064_v4 = vmul.f32 %v3127_v8, %v692_v63  ;;  %v1328_v6 = vmax.f32 %v1200_v59, 0.0  ;;  %v2575_v36 = vpop.f32.mrb[54].mxu1 }
 0x190   :  { %v1128_v5 = vmul.f32 %v3127_v8, %v948_v0  ;;  %v1392_v7 = vmax.f32 %v1264_v60, 0.0  ;;  %v1201_v3 = vadd.f32 %v3137_v18, %v1066_v61  ;;  %v1265_v9 = vadd.f32 %v3137_v18, %v1130_v62  ;;  %v708_v41 = vpop.f32.mrb[55].mxu0  ;;  %v964_v42 = vpop.f32.mrb[55].mxu1 }
 0x191   :  { %v1326_v10 = vmax.f32 %v1198_v2, 0.0  ;;  %v1390_v11 = vmax.f32 %v1262_v1, 0.0  ;;  %v1199_v12 = vadd.f32 %v3137_v18, %v1064_v4  ;;  %v2311_v14 = vpack.c.bf16 %v1328_v6, %v1328_v6 }
 0x192   :  { %v1263_v13 = vadd.f32 %v3137_v18, %v1128_v5  ;;  %v2375_v15 = vpack.c.bf16 %v1392_v7, %v1392_v7  ;;  %v1329_v16 = vmax.f32 %v1201_v3, 0.0  ;;  %v1393_v17 = vmax.f32 %v1265_v9, 0.0 }
 0x193   :  { %v2309_v19 = vpack.c.bf16 %v1326_v10, %v1326_v10  ;;  %v2373_v20 = vpack.c.bf16 %v1390_v11, %v1390_v11  ;;  %v1327_v21 = vmax.f32 %v1199_v12, 0.0  ;;  %1969 = vst.msk [vmem:[#allocation10 + $0xc8] sm:$0xf] %vm1918_vm1, %v2311_v14  ;;  %v1069_v27 = vmul.f32 %v3127_v8, %v2510_v23 }
 0x194   :  { %v1391_v22 = vmax.f32 %v1263_v13, 0.0  ;;  %2033 = vst.msk [vmem:[#allocation10 + $0x1c8] sm:$0xf] %vm1918_vm1, %v2375_v15  ;;  %v2312_v25 = vpack.c.bf16 %v1329_v16, %v1329_v16  ;;  %v2376_v26 = vpack.c.bf16 %v1393_v17, %v1393_v17  ;;  %v1133_v28 = vmul.f32 %v3127_v8, %v2574_v24  ;;  %v2514_v63 = vpop.f32.mrb[56].mxu0 }
 0x195   :  { %1967 = vst.msk [vmem:[#allocation10 + $0xc0] sm:$0xf] %vm1918_vm1, %v2309_v19  ;;  %2031 = vst.msk [vmem:[#allocation10 + $0x1c0] sm:$0xf] %vm1918_vm1, %v2373_v20  ;;  %v2310_v31 = vpack.c.bf16 %v1327_v21, %v1327_v21  ;;  %v1067_v33 = vmul.f32 %v3127_v8, %v705_v29  ;;  %v1131_v34 = vmul.f32 %v3127_v8, %v961_v30  ;;  %v2578_v0 = vpop.f32.mrb[56].mxu1  ;;  %v721_v6 = vpop.f32.mrb[57].mxu0 }
 0x196   :  { %v2374_v32 = vpack.c.bf16 %v1391_v22, %v1391_v22  ;;  %1970 = vst.msk [vmem:[#allocation10 + $0xcc] sm:$0xf] %vm1918_vm1, %v2312_v25  ;;  %2034 = vst.msk [vmem:[#allocation10 + $0x1cc] sm:$0xf] %vm1918_vm1, %v2376_v26  ;;  %v1204_v37 = vadd.f32 %v3137_v18, %v1069_v27  ;;  %v1268_v38 = vadd.f32 %v3137_v18, %v1133_v28  ;;  %v977_v7 = vpop.f32.mrb[57].mxu1  ;;  %v2515_v12 = vpop.f32.mrb[58].mxu0 }
 0x197   :  { %v1070_v39 = vmul.f32 %v3127_v8, %v2511_v35  ;;  %v1134_v40 = vmul.f32 %v3127_v8, %v2575_v36  ;;  %1968 = vst.msk [vmem:[#allocation10 + $0xc4] sm:$0xf] %vm1918_vm1, %v2310_v31  ;;  %v1202_v43 = vadd.f32 %v3137_v18, %v1067_v33  ;;  %v1266_v44 = vadd.f32 %v3137_v18, %v1131_v34  ;;  %v2579_v13 = vpop.f32.mrb[58].mxu1  ;;  %v724_v19 = vpop.f32.mrb[59].mxu0 }
 0x198   :  { %2032 = vst.msk [vmem:[#allocation10 + $0x1c4] sm:$0xf] %vm1918_vm1, %v2374_v32  ;;  %v1068_v45 = vmul.f32 %v3127_v8, %v708_v41  ;;  %v1132_v46 = vmul.f32 %v3127_v8, %v964_v42  ;;  %v1332_v47 = vmax.f32 %v1204_v37, 0.0  ;;  %v1396_v48 = vmax.f32 %v1268_v38, 0.0  ;;  %v980_v20 = vpop.f32.mrb[59].mxu1 }
 0x199   :  { %v1205_v49 = vadd.f32 %v3137_v18, %v1070_v39  ;;  %v1269_v50 = vadd.f32 %v3137_v18, %v1134_v40  ;;  %v1330_v51 = vmax.f32 %v1202_v43, 0.0  ;;  %v1394_v52 = vmax.f32 %v1266_v44, 0.0 }
 0x19a   :  { %v1203_v53 = vadd.f32 %v3137_v18, %v1068_v45  ;;  %v1267_v54 = vadd.f32 %v3137_v18, %v1132_v46  ;;  %v2315_v55 = vpack.c.bf16 %v1332_v47, %v1332_v47  ;;  %v2379_v56 = vpack.c.bf16 %v1396_v48, %v1396_v48 }
 0x19b   :  { %v1333_v57 = vmax.f32 %v1205_v49, 0.0  ;;  %v1397_v58 = vmax.f32 %v1269_v50, 0.0  ;;  %v2313_v59 = vpack.c.bf16 %v1330_v51, %v1330_v51  ;;  %v2377_v60 = vpack.c.bf16 %v1394_v52, %v1394_v52 }
 0x19c   :  { %v1331_v61 = vmax.f32 %v1203_v53, 0.0  ;;  %v1395_v62 = vmax.f32 %v1267_v54, 0.0  ;;  %1973 = vst.msk [vmem:[#allocation10 + $0xd8] sm:$0xf] %vm1918_vm1, %v2315_v55  ;;  %2037 = vst.msk [vmem:[#allocation10 + $0x1d8] sm:$0xf] %vm1918_vm1, %v2379_v56  ;;  %v1073_v4 = vmul.f32 %v3127_v8, %v2514_v63  ;;  %v1137_v5 = vmul.f32 %v3127_v8, %v2578_v0 }
 0x19d   :  { %v2316_v2 = vpack.c.bf16 %v1333_v57, %v1333_v57  ;;  %v2380_v1 = vpack.c.bf16 %v1397_v58, %v1397_v58  ;;  %1971 = vst.msk [vmem:[#allocation10 + $0xd0] sm:$0xf] %vm1918_vm1, %v2313_v59  ;;  %2035 = vst.msk [vmem:[#allocation10 + $0x1d0] sm:$0xf] %vm1918_vm1, %v2377_v60  ;;  %v1071_v10 = vmul.f32 %v3127_v8, %v721_v6  ;;  %v2518_v41 = vpop.f32.mrb[60].mxu0  ;;  %v2582_v42 = vpop.f32.mrb[60].mxu1 }
 0x19e   :  { %v2314_v3 = vpack.c.bf16 %v1331_v61, %v1331_v61  ;;  %v2378_v9 = vpack.c.bf16 %v1395_v62, %v1395_v62  ;;  %v1135_v11 = vmul.f32 %v3127_v8, %v977_v7  ;;  %v1208_v14 = vadd.f32 %v3137_v18, %v1073_v4  ;;  %v737_v47 = vpop.f32.mrb[61].mxu0  ;;  %v993_v48 = vpop.f32.mrb[61].mxu1 }
 0x19f   :  { %1974 = vst.msk [vmem:[#allocation10 + $0xdc] sm:$0xf] %vm1918_vm1, %v2316_v2  ;;  %2038 = vst.msk [vmem:[#allocation10 + $0x1dc] sm:$0xf] %vm1918_vm1, %v2380_v1  ;;  %v1272_v15 = vadd.f32 %v3137_v18, %v1137_v5  ;;  %v1074_v16 = vmul.f32 %v3127_v8, %v2515_v12  ;;  %v1138_v17 = vmul.f32 %v3127_v8, %v2579_v13  ;;  %v2519_v53 = vpop.f32.mrb[62].mxu0  ;;  %v2583_v54 = vpop.f32.mrb[62].mxu1 }
 0x1a0   :  { %1972 = vst.msk [vmem:[#allocation10 + $0xd4] sm:$0xf] %vm1918_vm1, %v2314_v3  ;;  %2036 = vst.msk [vmem:[#allocation10 + $0x1d4] sm:$0xf] %vm1918_vm1, %v2378_v9  ;;  %v1206_v21 = vadd.f32 %v3137_v18, %v1071_v10  ;;  %v1270_v22 = vadd.f32 %v3137_v18, %v1135_v11  ;;  %v1072_v23 = vmul.f32 %v3127_v8, %v724_v19  ;;  %v1336_v25 = vmax.f32 %v1208_v14, 0.0  ;;  %v740_v59 = vpop.f32.mrb[63].mxu0 }
 0x1a1   :  { %v1136_v24 = vmul.f32 %v3127_v8, %v980_v20  ;;  %v1400_v26 = vmax.f32 %v1272_v15, 0.0  ;;  %v1209_v27 = vadd.f32 %v3137_v18, %v1074_v16  ;;  %v1273_v28 = vadd.f32 %v3137_v18, %v1138_v17  ;;  %v996_v60 = vpop.f32.mrb[63].mxu1 }
 0x1a2   :  { %v1334_v29 = vmax.f32 %v1206_v21, 0.0  ;;  %v1398_v30 = vmax.f32 %v1270_v22, 0.0  ;;  %v1207_v31 = vadd.f32 %v3137_v18, %v1072_v23  ;;  %v2319_v33 = vpack.c.bf16 %v1336_v25, %v1336_v25 }
 0x1a3   :  { %v1271_v32 = vadd.f32 %v3137_v18, %v1136_v24  ;;  %v2383_v34 = vpack.c.bf16 %v1400_v26, %v1400_v26  ;;  %v1337_v35 = vmax.f32 %v1209_v27, 0.0  ;;  %v1401_v36 = vmax.f32 %v1273_v28, 0.0 }
 0x1a4   :  { %v2317_v37 = vpack.c.bf16 %v1334_v29, %v1334_v29  ;;  %v2381_v38 = vpack.c.bf16 %v1398_v30, %v1398_v30  ;;  %v1335_v39 = vmax.f32 %v1207_v31, 0.0  ;;  %1977 = vst.msk [vmem:[#allocation10 + $0xe8] sm:$0xf] %vm1918_vm1, %v2319_v33  ;;  %v1077_v45 = vmul.f32 %v3127_v8, %v2518_v41 }
 0x1a5   :  { %v1399_v40 = vmax.f32 %v1271_v32, 0.0  ;;  %2041 = vst.msk [vmem:[#allocation10 + $0x1e8] sm:$0xf] %vm1918_vm1, %v2383_v34  ;;  %v2320_v43 = vpack.c.bf16 %v1337_v35, %v1337_v35  ;;  %v2384_v44 = vpack.c.bf16 %v1401_v36, %v1401_v36  ;;  %v1141_v46 = vmul.f32 %v3127_v8, %v2582_v42 }
 0x1a6   :  { %1975 = vst.msk [vmem:[#allocation10 + $0xe0] sm:$0xf] %vm1918_vm1, %v2317_v37  ;;  %2039 = vst.msk [vmem:[#allocation10 + $0x1e0] sm:$0xf] %vm1918_vm1, %v2381_v38  ;;  %v2318_v49 = vpack.c.bf16 %v1335_v39, %v1335_v39  ;;  %v1075_v51 = vmul.f32 %v3127_v8, %v737_v47  ;;  %v1139_v52 = vmul.f32 %v3127_v8, %v993_v48 }
 0x1a7   :  { %v2382_v50 = vpack.c.bf16 %v1399_v40, %v1399_v40  ;;  %1978 = vst.msk [vmem:[#allocation10 + $0xec] sm:$0xf] %vm1918_vm1, %v2320_v43  ;;  %2042 = vst.msk [vmem:[#allocation10 + $0x1ec] sm:$0xf] %vm1918_vm1, %v2384_v44  ;;  %v1212_v55 = vadd.f32 %v3137_v18, %v1077_v45  ;;  %v1276_v56 = vadd.f32 %v3137_v18, %v1141_v46 }
 0x1a8   :  { %v1078_v57 = vmul.f32 %v3127_v8, %v2519_v53  ;;  %v1142_v58 = vmul.f32 %v3127_v8, %v2583_v54  ;;  %1976 = vst.msk [vmem:[#allocation10 + $0xe4] sm:$0xf] %vm1918_vm1, %v2318_v49  ;;  %v1210_v61 = vadd.f32 %v3137_v18, %v1075_v51  ;;  %v1274_v62 = vadd.f32 %v3137_v18, %v1139_v52 }
 0x1a9   :  { %2040 = vst.msk [vmem:[#allocation10 + $0x1e4] sm:$0xf] %vm1918_vm1, %v2382_v50  ;;  %v1076_v63 = vmul.f32 %v3127_v8, %v740_v59  ;;  %v1140_v0 = vmul.f32 %v3127_v8, %v996_v60  ;;  %v1340_v2 = vmax.f32 %v1212_v55, 0.0  ;;  %v1404_v1 = vmax.f32 %v1276_v56, 0.0 }
 0x1aa   :  { %v1213_v4 = vadd.f32 %v3137_v18, %v1078_v57  ;;  %v1277_v5 = vadd.f32 %v3137_v18, %v1142_v58  ;;  %v1338_v6 = vmax.f32 %v1210_v61, 0.0  ;;  %v1402_v7 = vmax.f32 %v1274_v62, 0.0 }
 0x1ab   :  { %v1211_v3 = vadd.f32 %v3137_v18, %v1076_v63  ;;  %v1275_v9 = vadd.f32 %v3137_v18, %v1140_v0  ;;  %v2323_v10 = vpack.c.bf16 %v1340_v2, %v1340_v2  ;;  %v2387_v11 = vpack.c.bf16 %v1404_v1, %v1404_v1 }
 0x1ac   :  { %v1341_v12 = vmax.f32 %v1213_v4, 0.0  ;;  %v1405_v13 = vmax.f32 %v1277_v5, 0.0  ;;  %v2321_v14 = vpack.c.bf16 %v1338_v6, %v1338_v6  ;;  %v2385_v8 = vpack.c.bf16 %v1402_v7, %v1402_v7 }
 0x1ad   :  { %v1339_v15 = vmax.f32 %v1211_v3, 0.0  ;;  %v1403_v16 = vmax.f32 %v1275_v9, 0.0  ;;  %1981 = vst.msk [vmem:[#allocation10 + $0xf8] sm:$0xf] %vm1918_vm1, %v2323_v10  ;;  %2045 = vst.msk [vmem:[#allocation10 + $0x1f8] sm:$0xf] %vm1918_vm1, %v2387_v11 }
 0x1ae   :  { %v2324_v17 = vpack.c.bf16 %v1341_v12, %v1341_v12  ;;  %v2388_v19 = vpack.c.bf16 %v1405_v13, %v1405_v13  ;;  %1979 = vst.msk [vmem:[#allocation10 + $0xf0] sm:$0xf] %vm1918_vm1, %v2321_v14  ;;  %2043 = vst.msk [vmem:[#allocation10 + $0x1f0] sm:$0xf] %vm1918_vm1, %v2385_v8 }
 0x1af   :  { %v2322_v18 = vpack.c.bf16 %v1339_v15, %v1339_v15  ;;  %v2386_v20 = vpack.c.bf16 %v1403_v16, %v1403_v16 }
 0x1b0   :  { %1982 = vst.msk [vmem:[#allocation10 + $0xfc] sm:$0xf] %vm1918_vm1, %v2324_v17  ;;  %2046 = vst.msk [vmem:[#allocation10 + $0x1fc] sm:$0xf] %vm1918_vm1, %v2388_v19 }
 0x1b1   :  { %1980 = vst.msk [vmem:[#allocation10 + $0xf4] sm:$0xf] %vm1918_vm1, %v2322_v18  ;;  %2044 = vst.msk [vmem:[#allocation10 + $0x1f4] sm:$0xf] %vm1918_vm1, %v2386_v20 }
 0x1b2   :  { %2697 = shalt.err (!%p2694_p8)
}
 0x1b3   :  { %s2698_s19 = scalar_lea.hbm %s3276_s4, 8192 }
 0x1b4   :  { %p2699_p9 = scmp.ne.s32.totalorder %s3276_s4, %s2698_s19  ;;  %p2702_p10 = scmp.lt.u32.totalorder %s2698_s19, %s3276_s4 }
 0x1b6   :  { %p2704_p11 = pnand %p2702_p10, %p2699_p9 }
 0x1b8   :  { %2707 = shalt.err (!%p2704_p11)
}
 0x1b9   :  { %2058 = dma.vmem_to_hbm [thread:$0]  %s2053_s15, 8192, %s3276_s4, [#allocation4], %s2717_s25, %s2717_s25, %s2718_s26  }
 0x1ba   :  { %2714 = dma.done.wait [#allocation4], 8192  }
 0x1bb   :  { %2715 = vsyncadd [#allocation4], 4294959104 }
 0x1bc   :  { %2062 = vsyncpa [#allocation3], 1 }
 0x1bd   :  { %2063 = vsyncpa [#allocation6], 1 }
 0x1be   :  { %2064 = vsyncpa [#allocation9], 1 }
 0x1bf   :  { %2065 = vsyncpa [#allocation4], 1 }

</bundles_post_ra>
